<compile_context>
chip_gen: v7x
topology: tpu7x:2x2x1
jax: 0.10.0
libtpu: 0.0.40
codegen_flags: <defaults>
</compile_context>

<pallas_src>
import jax
import jax.numpy as jnp
from jax.experimental import pallas as pl
from jax.experimental.pallas import tpu as pltpu

# Constants implied by the module (forward hardcodes view(-1, 49, 16), i.e.
# in_chan=1, 28x28 images, patch 4).
IN_CHAN = 1
IMG_HW = 28
PATCH = 4
GRID_H = IMG_HW // PATCH                      # 7 patches per side
NUM_PATCHES = GRID_H * GRID_H                 # 49
EMB = IN_CHAN * PATCH * PATCH                 # 16
SEQ = NUM_PATCHES + 1                         # 50
IN_FLAT = IN_CHAN * IMG_HW * IMG_HW           # 784  (lane-dense input row)
OUT_FLAT = SEQ * EMB                          # 800  (lane-dense output row)


# ------------------- fused kernel: one matmul + bias add --------------------
def _fused_embed_kernel(x_ref, w_ref, b_ref, o_ref):
    # x_ref: (TB, 784) f32   w_ref: (784, 800) bf16   b_ref: (1, 800) f32
    # o_ref: (TB, 800) f32
    o_ref[...] = (
        jnp.dot(x_ref[...].astype(jnp.bfloat16), w_ref[...],
                preferred_element_type=jnp.float32)
        + b_ref[...]
    )


# --------------------- generation-aware batch tiling ------------------------
def _round_up(x, m):
    return ((x + m - 1) // m) * m


def _select_tiling(B):
    """Pick (batch_tile, vmem_limit_bytes) for the current TPU generation."""
    try:
        vmem_cap = pltpu.get_tpu_info().vmem_capacity_bytes
    except Exception:
        vmem_cap = 128 * 1024 * 1024
    small_vmem = vmem_cap < (100 << 20)        # 64 MiB generation (v7x): 2 TCs/chip
    max_tb = 1024 if small_vmem else 2048      # keep double-buffered tiles in VMEM
    vmem_ceiling = (48 << 20) if small_vmem else (96 << 20)

    if B <= max_tb:
        tb = B
        # v7x: guarantee >= 2 grid steps so dimension_semantics=("parallel",)
        # can shard the batch across both TensorCores (8-aligned half-batch).
        if small_vmem and B >= 16:
            tb = _round_up((B + 1) // 2, 8)
    else:
        tb = max_tb
        for cand in (2048, 1536, 1024, 768, 512, 384, 256, 128, 64):
            if cand <= max_tb and B % cand == 0:
                tb = cand
                break
        # otherwise keep max_tb; Pallas masks the ragged tail block.

    # Double-buffered f32 x/out tiles + (conservatively double-buffered) bf16 BigW.
    need = 2 * tb * (IN_FLAT + OUT_FLAT) * 4 + 2 * IN_FLAT * OUT_FLAT * 2
    vmem_limit = min(vmem_ceiling,
                     max(32 << 20, _round_up(need + (8 << 20), 1 << 20)))
    return tb, vmem_limit


def _fused_embed_call(x_flat, big_w, big_b):
    B = x_flat.shape[0]
    tb, vmem_limit = _select_tiling(B)
    return pl.pallas_call(
        _fused_embed_kernel,
        out_shape=jax.ShapeDtypeStruct((B, OUT_FLAT), jnp.float32),
        grid=(pl.cdiv(B, tb),),
        in_specs=[
            pl.BlockSpec((tb, IN_FLAT), lambda i: (i, 0)),
            pl.BlockSpec((IN_FLAT, OUT_FLAT), lambda i: (0, 0)),   # resident bf16
            pl.BlockSpec((1, OUT_FLAT), lambda i: (0, 0)),         # resident bias
        ],
        out_specs=pl.BlockSpec((tb, OUT_FLAT), lambda i: (i, 0)),
        compiler_params=pltpu.CompilerParams(
            dimension_semantics=("parallel",),        # megacore-shard the batch
            vmem_limit_bytes=vmem_limit,
        ),
    )(x_flat, big_w, big_b)


# ------------- fold Conv2d + torch view + cls + positions into (W, b) -------
def fold_embedding_params(conv_w, conv_b, cls_token, positions):
    """Build BigW (784, 800) bf16 and BigB (1, 800) f32 reproducing torch forward.

    Call ONCE per parameter set (parameter-init / load time), NOT per forward:
    the zeros + scatter pass and the BigW materialization are hoisted here.

    Output column layout (torch order, flattened (50, 16)):
      cols [0, 16)          : cls token slot (matmul contributes 0)
      col  16 + o*49 + p    : conv output channel o at patch p = ph*7 + pw
                              (this IS torch's raw `view(-1, 49, 16)` order)
    Input row layout: flat NCHW pixel index h*28 + w (C = 1).
    """
    o, ph, pw, kh, kw = jnp.meshgrid(
        jnp.arange(EMB), jnp.arange(GRID_H), jnp.arange(GRID_H),
        jnp.arange(PATCH), jnp.arange(PATCH), indexing="ij")
    rows = (ph * PATCH + kh) * IMG_HW + (pw * PATCH + kw)
    cols = EMB + o * NUM_PATCHES + (ph * GRID_H + pw)
    vals = conv_w[o, 0, kh, kw].astype(jnp.float32)

    big_w = jnp.zeros((IN_FLAT, OUT_FLAT), jnp.float32)
    big_w = big_w.at[rows.ravel(), cols.ravel()].set(vals.ravel())
    big_w = big_w.astype(jnp.bfloat16)          # MXU-friendly single-pass operand

    big_b = positions.reshape(1, OUT_FLAT).astype(jnp.float32) + jnp.concatenate(
        [cls_token.reshape(EMB).astype(jnp.float32),
         jnp.repeat(conv_b.astype(jnp.float32), NUM_PATCHES)]
    ).reshape(1, OUT_FLAT)
    return big_w, big_b


# ------------------------------ forward wrapper ------------------------------
def embedding_forward(x_nchw, big_w, big_b):
    """x_nchw: (B, 1, 28, 28) f32 -> (B, 50, 16) f32, matching the torch module.

    big_w/big_b come from fold_embedding_params (computed once, reused).
    """
    B = x_nchw.shape[0]
    x_flat = x_nchw.reshape(B, IN_FLAT)          # layout-preserving, no HBM pass
    out_flat = _fused_embed_call(x_flat, big_w, big_b)
    return out_flat.reshape(B, SEQ, EMB)         # layout-preserving


# ------------------------------ pure-JAX reference ---------------------------
def reference(x_nchw, conv_w, conv_b, cls_token, positions):
    out = jax.lax.conv_general_dilated(
        x_nchw, conv_w, window_strides=(PATCH, PATCH), padding="VALID",
        dimension_numbers=("NCHW", "OIHW", "NCHW"))
    out = out + conv_b.reshape(1, EMB, 1, 1)
    B = x_nchw.shape[0]
    xv = out.reshape(B, NUM_PATCHES, EMB)        # same raw view as torch
    cls = jnp.broadcast_to(cls_token.reshape(1, 1, EMB), (B, 1, EMB))
    return jnp.concatenate([cls, xv], axis=1) + positions[None]


if __name__ == "__main__":
    key = jax.random.PRNGKey(0)
    k_x, k_w, k_b, k_cls, k_pos = jax.random.split(key, 5)

    B = 2
    x = jax.random.normal(k_x, (B, IN_CHAN, IMG_HW, IMG_HW), dtype=jnp.float32)
    conv_w = jax.random.normal(k_w, (EMB, IN_CHAN, PATCH, PATCH), dtype=jnp.float32) * 0.1
    conv_b = jax.random.normal(k_b, (EMB,), dtype=jnp.float32) * 0.1
    cls_token = jax.random.normal(k_cls, (1, 1, EMB), dtype=jnp.float32)
    positions = jax.random.normal(k_pos, (SEQ, EMB), dtype=jnp.float32)

    # Fold once (parameter-init time), reuse across forwards.
    big_w, big_b = fold_embedding_params(conv_w, conv_b, cls_token, positions)
    big_w, big_b = jax.block_until_ready((big_w, big_b))

    out = embedding_forward(x, big_w, big_b)
    out = jax.block_until_ready(out)

    ref = reference(x, conv_w, conv_b, cls_token, positions)
    assert out.shape == (B, SEQ, EMB), out.shape
    assert jnp.allclose(out, ref, rtol=1e-2, atol=1e-2), "mismatch vs reference"

    print("KERNEL_OK")
</pallas_src>

<mosaic_0001>
module attributes {stable_mosaic.version = 11 : i64} {
  func.func @_fused_embed_kernel(%arg0: i32, %arg1: memref<2x784xf32, #tpu.memory_space<vmem>>, %arg2: memref<784x800xbf16, #tpu.memory_space<vmem>>, %arg3: memref<1x800xf32, #tpu.memory_space<vmem>>, %arg4: memref<2x800xf32, #tpu.memory_space<vmem>>) attributes {dimension_semantics = [#tpu.dimension_semantics<parallel>], iteration_bounds = array<i64: 1>, scalar_prefetch = 0 : i64, scratch_operands = 0 : i64, tpu.core_type = #tpu.core_type<tc>, window_params = [{transform_indices = @transform_0, window_bounds = array<i64: 2, 784>}, {pipeline_mode = #tpu.pipeline_mode<synchronous>, transform_indices = @transform_1, window_bounds = array<i64: 784, 800>}, {pipeline_mode = #tpu.pipeline_mode<synchronous>, transform_indices = @transform_2, window_bounds = array<i64: 1, 800>}, {transform_indices = @transform_3, window_bounds = array<i64: 2, 800>}]} {
    %c0 = arith.constant 0 : index
    %c0_0 = arith.constant 0 : index
    %0 = vector.load %arg1[%c0, %c0_0] : memref<2x784xf32, #tpu.memory_space<vmem>>, vector<2x784xf32>
    %1 = arith.truncf %0 : vector<2x784xf32> to vector<2x784xbf16>
    %c0_1 = arith.constant 0 : index
    %c0_2 = arith.constant 0 : index
    %2 = vector.load %arg2[%c0_1, %c0_2] : memref<784x800xbf16, #tpu.memory_space<vmem>>, vector<784x800xbf16>
    %cst = arith.constant dense<0.000000e+00> : vector<2x800xf32>
    %3 = tpu.matmul %1, %2, %cst {dimension_numbers = #tpu.dot_dimension_numbers<[1], [0], [0], [1], [0, 0, 1, 1], [], []>} : vector<2x784xbf16>, vector<784x800xbf16>, vector<2x800xf32> -> vector<2x800xf32>
    %c0_3 = arith.constant 0 : index
    %c0_4 = arith.constant 0 : index
    %4 = vector.load %arg3[%c0_3, %c0_4] : memref<1x800xf32, #tpu.memory_space<vmem>>, vector<1x800xf32>
    %5 = vector.broadcast %4 : vector<1x800xf32> to vector<2x800xf32>
    %6 = arith.addf %3, %5 : vector<2x800xf32>
    %c0_5 = arith.constant 0 : index
    %c0_6 = arith.constant 0 : index
    %7 = vector.load %arg4[%c0_5, %c0_6] : memref<2x800xf32, #tpu.memory_space<vmem>>, vector<2x800xf32>
    tpu.vector_store %arg4[%c0_5, %c0_6], %6 {strides = array<i32>} : memref<2x800xf32, #tpu.memory_space<vmem>>, vector<2x800xf32>,
    return
  }
  func.func @transform_0(%arg0: i32) -> (i32, i32) {
    %c0_i32 = arith.constant 0 : i32
    %c0_i32_0 = arith.constant 0 : i32
    return %arg0, %c0_i32 : i32, i32
  }
  func.func @transform_1(%arg0: i32) -> (i32, i32) {
    %c0_i32 = arith.constant 0 : i32
    %c0_i32_0 = arith.constant 0 : i32
    %c0_i32_1 = arith.constant 0 : i32
    return %c0_i32, %c0_i32_0 : i32, i32
  }
  func.func @transform_2(%arg0: i32) -> (i32, i32) {
    %c0_i32 = arith.constant 0 : i32
    %c0_i32_0 = arith.constant 0 : i32
    %c0_i32_1 = arith.constant 0 : i32
    return %c0_i32, %c0_i32_0 : i32, i32
  }
  func.func @transform_3(%arg0: i32) -> (i32, i32) {
    %c0_i32 = arith.constant 0 : i32
    %c0_i32_0 = arith.constant 0 : i32
    return %arg0, %c0_i32 : i32, i32
  }
}

</mosaic_0001>

<bundles_post_ra>
// kernel: tpu_custom_call.1
= control target key start
LH: loop header
LB: loop body
LE: loop exit
PB: predicated region body
PF: predicated region fallthrough
CT: control target
= control target key end

     0   :  { %8 = vsyncpa [#allocation3], 0  ;;  %s4246_s0 = inlined_call_operand.hbm [shape: f32[2,784], index: 0, kind: input, shape index: {}]   ;;  %s4247_s1 = inlined_call_operand.hbm [shape: bf16[784,800], index: 1, kind: input, shape index: {}]   ;;  %s4248_s2 = inlined_call_operand.hbm [shape: f32[1,800], index: 2, kind: input, shape index: {}]   ;;  %s4249_s3 = inlined_call_operand.hbm [shape: f32[2,800], index: 3, kind: output, shape index: {}]  }
   0x1   :  { %9 = vsyncpa [#allocation6], 0 }
   0x2   :  { %10 = vsyncpa [#allocation4], 0  ;;  %s4073_s12 = smov [#allocation5]   ;;  %s3979_s16 = scalar_lea.hbm %s4247_s1, 43904 }
   0x3   :  { %s26_s13 = sshll.u32 %s4073_s12, 4  ;;  %p3980_p0 = scmp.ne.s32.totalorder %s4247_s1, %s3979_s16  ;;  %s27_s13 = int_to_ptr.vmem [resolvable:$true] %s26_s13 }
   0x4   :  { %p3983_p1 = scmp.lt.u32.totalorder %s3979_s16, %s4247_s1 }
   0x6   :  { %p3985_p2 = pnand %p3983_p1, %p3980_p0 }
   0x8   :  { %3988 = shalt.err (!%p3985_p2)
}
   0x9   :  { %s3989_s21 = scalar_lea.vmem %s27_s13, 43904  ;;  %p3994_p4 = scmp.lt.s32.totalorder %s27_s13, %s27_s13 }
   0xa   :  { %p3990_p3 = scmp.ne.s32.totalorder %s27_s13, %s3989_s21  ;;  %p3995_p5 = scmp.lt.s32.totalorder %s3989_s21, %s3989_s21 }
   0xc   :  { %p3996_p6 = por %p3995_p5, %p3994_p4 }
   0xe   :  { %p3997_p7 = pnand %p3996_p6, %p3990_p3 }
  0x10   :  { %4000 = shalt.err (!%p3997_p7)
}
  0x11   :  { %s4074_s22 = smov 448   ;;  %s4075_s23 = smov 28  }
  0x12   :  { %32 = dma.hbm_to_vmem [thread:$0]  %s4247_s1, 43904, %s27_s13, [#allocation6], %s4074_s22, %s4074_s22, %s4075_s23  }
  0x13   :  { %s4076_s26 = smov [#allocation2]   ;;  %s4077_s28 = smov [#allocation7]  }
  0x14   :  { %s17_s27 = sshll.u32 %s4076_s26, 4  ;;  %s39_s29 = sshll.u32 %s4077_s28, 4  ;;  %s18_s27 = int_to_ptr.vmem [resolvable:$true] %s17_s27  ;;  %s40_s29 = int_to_ptr.vmem [resolvable:$true] %s39_s29 }
  0x15   :  { %s4001_s5 = scalar_lea.hbm %s4246_s0, 224 }
  0x16   :  { %p4002_p8 = scmp.ne.s32.totalorder %s4246_s0, %s4001_s5  ;;  %p4005_p9 = scmp.lt.u32.totalorder %s4001_s5, %s4246_s0 }
  0x18   :  { %p4007_p10 = pnand %p4005_p9, %p4002_p8 }
  0x1a   :  { %4010 = shalt.err (!%p4007_p10)
}
  0x1b   :  { %s4011_s1 = scalar_lea.vmem %s18_s27, 224  ;;  %p4016_p12 = scmp.lt.s32.totalorder %s18_s27, %s18_s27 }
  0x1c   :  { %p4012_p11 = scmp.ne.s32.totalorder %s18_s27, %s4011_s1  ;;  %p4017_p13 = scmp.lt.s32.totalorder %s4011_s1, %s4011_s1 }
  0x1e   :  { %p4018_p0 = por %p4017_p13, %p4016_p12 }
  0x20   :  { %p4019_p1 = pnand %p4018_p0, %p4012_p11 }
  0x22   :  { %4022 = shalt.err (!%p4019_p1)
}
  0x23   :  { %20 = dma.hbm_to_vmem [thread:$0]  %s4246_s0, 224, %s18_s27, [#allocation3]  }
  0x24   :  { %s4023_s14 = scalar_lea.hbm %s4248_s2, 112 }
  0x25   :  { %p4024_p2 = scmp.ne.s32.totalorder %s4248_s2, %s4023_s14  ;;  %p4027_p3 = scmp.lt.u32.totalorder %s4023_s14, %s4248_s2 }
  0x27   :  { %p4029_p4 = pnand %p4027_p3, %p4024_p2 }
  0x29   :  { %4032 = shalt.err (!%p4029_p4)
}
  0x2a   :  { %s4033_s19 = scalar_lea.vmem %s40_s29, 112  ;;  %s4037_s20 = scalar_lea.vmem %s40_s29, 128 }
  0x2b   :  { %p4034_p5 = scmp.ne.s32.totalorder %s40_s29, %s4033_s19  ;;  %p4038_p6 = scmp.lt.s32.totalorder %s40_s29, %s40_s29 }
  0x2c   :  { %p4039_p7 = scmp.lt.s32.totalorder %s4037_s20, %s4033_s19 }
  0x2e   :  { %p4040_p8 = por %p4039_p7, %p4038_p6 }
  0x30   :  { %p4041_p9 = pnand %p4040_p8, %p4034_p5 }
  0x32   :  { %4044 = shalt.err (!%p4041_p9)
}
  0x33   :  { %42 = dma.hbm_to_vmem [thread:$0]  %s4248_s2, 112, %s40_s29, [#allocation6]  }
  0x34   :  { %4067 = dma.done.wait [#allocation3], 224  }
  0x35   :  { %4068 = vsyncadd [#allocation3], 4294967072 }
  0x36   :  { %4069 = dma.done.wait [#allocation6], 44016  }
  0x37   :  { %4070 = vsyncadd [#allocation6], 4294923280  ;;  %v3487_v0 = vld [vmem:[#allocation5 + $0x4] ss:$28 sps:$4 sm:$0xff]   ;;  %v3493_v4 = vld [vmem:[#allocation5 + $0x3c] ss:$28 sps:$4 sm:$0xff]   ;;  %v61_v38 = vlaneseq }
  0x38   :  { %v3489_v1 = vld [vmem:[#allocation5 + $0x384] ss:$28 sps:$4 sm:$0xff]   ;;  %2301 = vmatprep.subr.bf16.mxu1 %v3487_v0  ;;  %v3495_v5 = vld [vmem:[#allocation5 + $0x3bc] ss:$28 sps:$4 sm:$0xff]   ;;  %v3499_v8 = vld [vmem:[#allocation5 + $0x74] ss:$28 sps:$4 sm:$0xff]  }
  0x39   :  { %v3491_v2 = vld [vmem:[#allocation5] ss:$28 sps:$4 sm:$0xff]   ;;  %2342 = vmatprep.subr.bf16.mxu0 %v3489_v1  ;;  %v3497_v6 = vld [vmem:[#allocation5 + $0x38] ss:$28 sps:$4 sm:$0xff]   ;;  %v3503_v10 = vld [vmem:[#allocation5 + $0x70] ss:$28 sps:$4 sm:$0xff]  }
  0x3a   :  { %v3492_v3 = vld [vmem:[#allocation5 + $0x380] ss:$28 sps:$4 sm:$0xff]   ;;  %2302 = vmatpush1.bf16.msra.mxu1 %v3491_v2  ;;  %v3498_v7 = vld [vmem:[#allocation5 + $0x3b8] ss:$28 sps:$4 sm:$0xff]   ;;  %v3504_v11 = vld [vmem:[#allocation5 + $0x3f0] ss:$28 sps:$4 sm:$0xff]  }
  0x3b   :  { %2343 = vmatpush1.bf16.msra.mxu0 %v3492_v3  ;;  %2303 = vmatprep.subr.bf16.mxu1 %v3493_v4  ;;  %v3501_v9 = vld [vmem:[#allocation5 + $0x3f4] ss:$28 sps:$4 sm:$0xff]   ;;  %v3505_v12 = vld [vmem:[#allocation5 + $0xac] ss:$28 sps:$4 sm:$0xff]   ;;  %v3511_v16 = vld [vmem:[#allocation5 + $0xe4] ss:$28 sps:$4 sm:$0xff]  }
  0x3c   :  { %2344 = vmatprep.subr.bf16.mxu0 %v3495_v5  ;;  %v3507_v13 = vld [vmem:[#allocation5 + $0x42c] ss:$28 sps:$4 sm:$0xff]   ;;  %v3513_v17 = vld [vmem:[#allocation5 + $0x464] ss:$28 sps:$4 sm:$0xff]   ;;  %v3517_v20 = vld [vmem:[#allocation5 + $0x11c] ss:$28 sps:$4 sm:$0xff]  }
  0x3d   :  { %v3509_v14 = vld [vmem:[#allocation5 + $0xa8] ss:$28 sps:$4 sm:$0xff]   ;;  %v3515_v18 = vld [vmem:[#allocation5 + $0xe0] ss:$28 sps:$4 sm:$0xff]   ;;  %v3521_v22 = vld [vmem:[#allocation5 + $0x118] ss:$28 sps:$4 sm:$0xff]  }
  0x3e   :  { %2304 = vmatpush1.bf16.msra.mxu1 %v3497_v6  ;;  %v3510_v15 = vld [vmem:[#allocation5 + $0x428] ss:$28 sps:$4 sm:$0xff]   ;;  %v3516_v19 = vld [vmem:[#allocation5 + $0x460] ss:$28 sps:$4 sm:$0xff]   ;;  %v3522_v23 = vld [vmem:[#allocation5 + $0x498] ss:$28 sps:$4 sm:$0xff]  }
  0x3f   :  { %2345 = vmatpush1.bf16.msra.mxu0 %v3498_v7  ;;  %2305 = vmatprep.subr.bf16.mxu1 %v3499_v8  ;;  %v3519_v21 = vld [vmem:[#allocation5 + $0x49c] ss:$28 sps:$4 sm:$0xff]   ;;  %v3523_v24 = vld [vmem:[#allocation5 + $0x154] ss:$28 sps:$4 sm:$0xff]   ;;  %v3529_v28 = vld [vmem:[#allocation5 + $0x18c] ss:$28 sps:$4 sm:$0xff]  }
  0x40   :  { %2346 = vmatprep.subr.bf16.mxu0 %v3501_v9  ;;  %v3525_v25 = vld [vmem:[#allocation5 + $0x4d4] ss:$28 sps:$4 sm:$0xff]   ;;  %v3531_v29 = vld [vmem:[#allocation5 + $0x50c] ss:$28 sps:$4 sm:$0xff]   ;;  %v3535_v32 = vld [vmem:[#allocation5 + $0x1c4] ss:$28 sps:$4 sm:$0xff]  }
  0x41   :  { %v3527_v26 = vld [vmem:[#allocation5 + $0x150] ss:$28 sps:$4 sm:$0xff]   ;;  %v3533_v30 = vld [vmem:[#allocation5 + $0x188] ss:$28 sps:$4 sm:$0xff]   ;;  %v3539_v34 = vld [vmem:[#allocation5 + $0x1c0] ss:$28 sps:$4 sm:$0xff]  }
  0x42   :  { %2306 = vmatpush1.bf16.msra.mxu1 %v3503_v10  ;;  %v3528_v27 = vld [vmem:[#allocation5 + $0x4d0] ss:$28 sps:$4 sm:$0xff]   ;;  %v3534_v31 = vld [vmem:[#allocation5 + $0x508] ss:$28 sps:$4 sm:$0xff]   ;;  %v3540_v35 = vld [vmem:[#allocation5 + $0x540] ss:$28 sps:$4 sm:$0xff]  }
  0x43   :  { %2347 = vmatpush1.bf16.msra.mxu0 %v3504_v11  ;;  %2307 = vmatprep.subr.bf16.mxu1 %v3505_v12  ;;  %v3537_v33 = vld [vmem:[#allocation5 + $0x544] ss:$28 sps:$4 sm:$0xff]   ;;  %v4078_v36 = vmov 1983009808   ;;  %v3541_v39 = vld [vmem:[#allocation5 + $0x1fc] ss:$28 sps:$4 sm:$0xff]  }
  0x44   :  { %2348 = vmatprep.subr.bf16.mxu0 %v3507_v13  ;;  %v59_v37 = vunpack.c.l.s4 %v4078_v36  ;;  %v3543_v40 = vld [vmem:[#allocation5 + $0x57c] ss:$28 sps:$4 sm:$0xff]   ;;  %v4139_v43 = vshrl.u32 %v61_v38, 7  ;;  %v3547_v45 = vld [vmem:[#allocation5 + $0x234] ss:$28 sps:$4 sm:$0xff]   ;;  %vm2297_vm0 = vcmask 130048  }
  0x45   :  { %v3545_v41 = vld [vmem:[#allocation5 + $0x1f8] ss:$28 sps:$4 sm:$0xff]   ;;  %v3551_v47 = vld [vmem:[#allocation5 + $0x230] ss:$28 sps:$4 sm:$0xff]   ;;  %v3557_v53 = vld [vmem:[#allocation5 + $0x268] ss:$28 sps:$4 sm:$0xff]  }
  0x46   :  { %2308 = vmatpush1.bf16.msra.mxu1 %v3509_v14  ;;  %v60_v42 = vunpack.c.0.s8 %v59_v37  ;;  %v3546_v44 = vld [vmem:[#allocation5 + $0x578] ss:$28 sps:$4 sm:$0xff]   ;;  %v3552_v48 = vld [vmem:[#allocation5 + $0x5b0] ss:$28 sps:$4 sm:$0xff]   ;;  %v3558_v56 = vld [vmem:[#allocation5 + $0x5e8] ss:$28 sps:$4 sm:$0xff]  }
  0x47   :  { %2349 = vmatpush1.bf16.msra.mxu0 %v3510_v15  ;;  %2309 = vmatprep.subr.bf16.mxu1 %v3511_v16  ;;  %v3549_v46 = vld [vmem:[#allocation5 + $0x5b4] ss:$28 sps:$4 sm:$0xff]   ;;  %v3553_v50 = vld [vmem:[#allocation5 + $0x26c] ss:$28 sps:$4 sm:$0xff]   ;;  %v3559_v57 = vld [vmem:[#allocation5 + $0x2a4] ss:$28 sps:$4 sm:$0xff]  }
  0x48   :  { %2350 = vmatprep.subr.bf16.mxu0 %v3513_v17  ;;  %v4142_v49 = vsub.s32 %v60_v42, %v4139_v43  ;;  %v3555_v51 = vld [vmem:[#allocation5 + $0x5ec] ss:$28 sps:$4 sm:$0xff]   ;;  %v53_v52 = vld [vmem:[#allocation2] sm:$0xff]  ;;  %v3561_v58 = vld [vmem:[#allocation5 + $0x624] ss:$28 sps:$4 sm:$0xff]   ;;  %vm4081_vm1 = vmmov 0  }
  0x49   :  { %v57_v55 = vcombine.high %v53_v52, %v53_v52  ;;  %v3563_v61 = vld [vmem:[#allocation5 + $0x2a0] ss:$28 sps:$4 sm:$0xff]   ;;  %v3569_v4 = vld [vmem:[#allocation5 + $0x2d8] ss:$28 sps:$4 sm:$0xff]   ;;  %v3575_v8 = vld [vmem:[#allocation5 + $0x310] ss:$28 sps:$4 sm:$0xff]  }
  0x4a   :  { %2310 = vmatpush1.bf16.msra.mxu1 %v3515_v18  ;;  %v64_v54 = vrot.slane %v53_v52, %v4142_v49  ;;  %v3564_v0 = vld [vmem:[#allocation5 + $0x620] ss:$28 sps:$4 sm:$0xff]   ;;  %v3570_v5 = vld [vmem:[#allocation5 + $0x658] ss:$28 sps:$4 sm:$0xff]   ;;  %v3576_v9 = vld [vmem:[#allocation5 + $0x690] ss:$28 sps:$4 sm:$0xff]  }
  0x4b   :  { %2351 = vmatpush1.bf16.msra.mxu0 %v3516_v19  ;;  %2311 = vmatprep.subr.bf16.mxu1 %v3517_v20  ;;  %v71_v60 = vrot.slane %v57_v55, %v4142_v49  ;;  %v3565_v1 = vld [vmem:[#allocation5 + $0x2dc] ss:$28 sps:$4 sm:$0xff]   ;;  %v3571_v6 = vld [vmem:[#allocation5 + $0x314] ss:$28 sps:$4 sm:$0xff]   ;;  %v3577_v10 = vld [vmem:[#allocation5 + $0x34c] ss:$28 sps:$4 sm:$0xff]  }
  0x4c   :  { %2352 = vmatprep.subr.bf16.mxu0 %v3519_v21  ;;  %v72_v59 = vcombine.high %v64_v54, %v64_v54  ;;  %v3567_v2 = vld [vmem:[#allocation5 + $0x65c] ss:$28 sps:$4 sm:$0xff]   ;;  %v3573_v7 = vld [vmem:[#allocation5 + $0x694] ss:$28 sps:$4 sm:$0xff]   ;;  %v3579_v11 = vld [vmem:[#allocation5 + $0x6cc] ss:$28 sps:$4 sm:$0xff]   ;;  %v4152_v17 = vpack.c.bf16 %v64_v54, %v64_v54 }
  0x4d   :  { %v73_v63 = vcombine.high %v71_v60, %v71_v60  ;;  %v3581_v12 = vld [vmem:[#allocation5 + $0x348] ss:$28 sps:$4 sm:$0xff]   ;;  %v3584_v16 = vld [vmem:[#allocation5 + $0x700] ss:$28 sps:$4 sm:$0xff]   ;;  %v4154_v18 = vpack.c.bf16 %v71_v60, %v71_v60  ;;  %v3614_v38 = vld [vmem:[#allocation5 + $0x818] ss:$28 sps:$4 sm:$0xff]  }
  0x4e   :  { %2312 = vmatpush1.bf16.msra.mxu1 %v3521_v22  ;;  %v4146_v62 = vpack.c.bf16 %v72_v59, %v72_v59  ;;  %v3582_v13 = vld [vmem:[#allocation5 + $0x6c8] ss:$28 sps:$4 sm:$0xff]   ;;  %v3592_v20 = vld [vmem:[#allocation5 + $0x73c] ss:$28 sps:$4 sm:$0xff]   ;;  %vm2996_vm2 = vcmask 1041408   ;;  %vm2997_vm3 = vcmask 1043458  }
  0x4f   :  { %2353 = vmatpush1.bf16.msra.mxu0 %v3522_v23  ;;  %2313 = vmatprep.subr.bf16.mxu1 %v3523_v24  ;;  %v4148_v3 = vpack.c.bf16 %v73_v63, %v73_v63  ;;  %v3586_v14 = vld [vmem:[#allocation5 + $0x704] ss:$28 sps:$4 sm:$0xff]   ;;  %v3589_v15 = vld [vmem:[#allocation5 + $0xc] ss:$28 sps:$4 sm:$0xff]   ;;  %v3590_v22 = vld [vmem:[#allocation5 + $0x738] ss:$28 sps:$4 sm:$0xff]  }
  0x50   :  { %2354 = vmatprep.subr.bf16.mxu0 %v3525_v25  ;;  %2333 = vmatprep.mubr.bf16.mxu1 %v4146_v62  ;;  %v3587_v19 = vld [vmem:[#allocation5 + $0x8] ss:$28 sps:$4 sm:$0xff]   ;;  %v3593_v23 = vld [vmem:[#allocation5 + $0x40] ss:$28 sps:$4 sm:$0xff]   ;;  %v3598_v24 = vld [vmem:[#allocation5 + $0x774] ss:$28 sps:$4 sm:$0xff]  }
  0x51   :  { %2374 = vmatprep.mubr.bf16.mxu0 %v4148_v3  ;;  %v3595_v21 = vld [vmem:[#allocation5 + $0x44] ss:$28 sps:$4 sm:$0xff]   ;;  %v3601_v25 = vld [vmem:[#allocation5 + $0x7c] ss:$28 sps:$4 sm:$0xff]   ;;  %v3637_v55 = vld [vmem:[#allocation5 + $0x1cc] ss:$28 sps:$4 sm:$0xff]  }
  0x52   :  { %2314 = vmatpush1.bf16.msra.mxu1 %v3527_v26  ;;  %v3596_v26 = vld [vmem:[#allocation5 + $0x770] ss:$28 sps:$4 sm:$0xff]   ;;  %v3616_v36 = vld [vmem:[#allocation5 + $0x81c] ss:$28 sps:$4 sm:$0xff]   ;;  %v3619_v37 = vld [vmem:[#allocation5 + $0x124] ss:$28 sps:$4 sm:$0xff]  }
  0x53   :  { %2355 = vmatpush1.bf16.msra.mxu0 %v3528_v27  ;;  %2315 = vmatprep.subr.bf16.mxu1 %v3529_v28  ;;  %v3599_v27 = vld [vmem:[#allocation5 + $0x78] ss:$28 sps:$4 sm:$0xff]   ;;  %v3604_v28 = vld [vmem:[#allocation5 + $0x7ac] ss:$28 sps:$4 sm:$0xff]   ;;  %v3634_v54 = vld [vmem:[#allocation5 + $0x8c4] ss:$28 sps:$4 sm:$0xff]  }
  0x54   :  { %2356 = vmatprep.subr.bf16.mxu0 %v3531_v29  ;;  %v3607_v29 = vld [vmem:[#allocation5 + $0xb4] ss:$28 sps:$4 sm:$0xff]   ;;  %v4159_v42 = vld [vmem:[#allocation2 + $0x8] sm:$0x3f]  ;;  %v3626_v52 = vld [vmem:[#allocation5 + $0x888] ss:$28 sps:$4 sm:$0xff]  }
  0x55   :  { %v3643_v59 = vld [vmem:[#allocation5 + $0x204] ss:$28 sps:$4 sm:$0xff]   ;;  %v3638_v60 = vld [vmem:[#allocation5 + $0x8f8] ss:$28 sps:$4 sm:$0xff]   ;;  %vm2998_vm4 = vmor %vm2997_vm3, %vm2996_vm2  ;;  %vm2999_vm5 = vcmask 259076   ;;  %s4082_s2 = smov [#allocation8]  }
  0x56   :  { %2316 = vmatpush1.bf16.msra.mxu1 %v3533_v30  ;;  %v3602_v30 = vld [vmem:[#allocation5 + $0x7a8] ss:$28 sps:$4 sm:$0xff]   ;;  %v3646_v63 = vld [vmem:[#allocation5 + $0x934] ss:$28 sps:$4 sm:$0xff]   ;;  %s3008_s22 = sshll.u32 %s4082_s2, 4  ;;  %vm3000_vm6 = vmor %vm2999_vm5, %vm2998_vm4  ;;  %s3009_s22 = int_to_ptr.vmem [resolvable:$true] %s3008_s22 }
  0x57   :  { %2357 = vmatpush1.bf16.msra.mxu0 %v3534_v31  ;;  %2317 = vmatprep.subr.bf16.mxu1 %v3535_v32  ;;  %v3605_v31 = vld [vmem:[#allocation5 + $0xb0] ss:$28 sps:$4 sm:$0xff]   ;;  %v3610_v32 = vld [vmem:[#allocation5 + $0x7e4] ss:$28 sps:$4 sm:$0xff]   ;;  %s4045_s23 = scalar_lea.vmem %s3009_s22, 224  ;;  %p4050_p11 = scmp.lt.s32.totalorder %s3009_s22, %s3009_s22 }
  0x58   :  { %2358 = vmatprep.subr.bf16.mxu0 %v3537_v33  ;;  %v3613_v33 = vld [vmem:[#allocation5 + $0xec] ss:$28 sps:$4 sm:$0xff]   ;;  %p4046_p10 = scmp.ne.s32.totalorder %s3009_s22, %s4045_s23  ;;  %p4051_p12 = scmp.lt.s32.totalorder %s4045_s23, %s4045_s23 }
  0x5a   :  { %2318 = vmatpush1.bf16.msra.mxu1 %v3539_v34  ;;  %v3608_v34 = vld [vmem:[#allocation5 + $0x7e0] ss:$28 sps:$4 sm:$0xff]   ;;  %p4052_p13 = por %p4051_p12, %p4050_p11 }
  0x5b   :  { %2359 = vmatpush1.bf16.msra.mxu0 %v3540_v35  ;;  %2319 = vmatprep.subr.bf16.mxu1 %v3541_v39  ;;  %v3611_v35 = vld [vmem:[#allocation5 + $0xe8] ss:$28 sps:$4 sm:$0xff]   ;;  %v3617_v39 = vld [vmem:[#allocation5 + $0x120] ss:$28 sps:$4 sm:$0xff]  }
  0x5c   :  { %2360 = vmatprep.subr.bf16.mxu0 %v3543_v40  ;;  %v3622_v40 = vld [vmem:[#allocation5 + $0x854] ss:$28 sps:$4 sm:$0xff]   ;;  %p4053_p0 = pnand %p4052_p13, %p4046_p10 }
  0x5e   :  { %2320 = vmatpush1.bf16.msra.mxu1 %v3545_v41  ;;  %v3625_v41 = vld [vmem:[#allocation5 + $0x15c] ss:$28 sps:$4 sm:$0xff]  }
  0x5f   :  { %2361 = vmatpush1.bf16.msra.mxu0 %v3546_v44  ;;  %2321 = vmatprep.subr.bf16.mxu1 %v3547_v45  ;;  %v4163_v44 = vrot.slane %v4159_v42, %v4142_v49  ;;  %v3620_v45 = vld [vmem:[#allocation5 + $0x850] ss:$28 sps:$4 sm:$0xff]  }
  0x60   :  { %2362 = vmatprep.subr.bf16.mxu0 %v3549_v46  ;;  %v3623_v46 = vld [vmem:[#allocation5 + $0x158] ss:$28 sps:$4 sm:$0xff]  }
  0x62   :  { %2322 = vmatpush1.bf16.msra.mxu1 %v3551_v47  ;;  %v89_v47 = vcombine.high %v4163_v44, %v4163_v44 }
  0x63   :  { %2363 = vmatpush1.bf16.msra.mxu0 %v3552_v48  ;;  %2323 = vmatprep.subr.bf16.mxu1 %v3553_v50  ;;  %v3628_v48 = vld [vmem:[#allocation5 + $0x88c] ss:$28 sps:$4 sm:$0xff]   ;;  %v3631_v50 = vld [vmem:[#allocation5 + $0x194] ss:$28 sps:$4 sm:$0xff]  }
  0x64   :  { %2364 = vmatprep.subr.bf16.mxu0 %v3555_v51  ;;  %v4167_v51 = vpack.c.bf16 %v89_v47, %v89_v47  ;;  %v3707_v47 = vld [vmem:[#allocation5 + $0x4a4] ss:$28 sps:$4 sm:$0xff]  }
  0x66   :  { %2324 = vmatpush1.bf16.msra.mxu1 %v3557_v53  ;;  %v3629_v53 = vld [vmem:[#allocation5 + $0x190] ss:$28 sps:$4 sm:$0xff]  }
  0x67   :  { %2365 = vmatpush1.bf16.msra.mxu0 %v3558_v56  ;;  %2325 = vmatprep.subr.bf16.mxu1 %v3559_v57  ;;  %v3632_v56 = vld [vmem:[#allocation5 + $0x8c0] ss:$28 sps:$4 sm:$0xff]   ;;  %v3635_v57 = vld [vmem:[#allocation5 + $0x1c8] ss:$28 sps:$4 sm:$0xff]  }
  0x68   :  { %2366 = vmatprep.subr.bf16.mxu0 %v3561_v58  ;;  %v3640_v58 = vld [vmem:[#allocation5 + $0x8fc] ss:$28 sps:$4 sm:$0xff]  }
  0x6a   :  { %2326 = vmatpush1.bf16.msra.mxu1 %v3563_v61  ;;  %v3641_v61 = vld [vmem:[#allocation5 + $0x200] ss:$28 sps:$4 sm:$0xff]  }
  0x6b   :  { %2367 = vmatpush1.bf16.msra.mxu0 %v3564_v0  ;;  %2327 = vmatprep.subr.bf16.mxu1 %v3565_v1  ;;  %v3649_v0 = vld [vmem:[#allocation5 + $0x23c] ss:$28 sps:$4 sm:$0xff]   ;;  %v3644_v1 = vld [vmem:[#allocation5 + $0x930] ss:$28 sps:$4 sm:$0xff]  }
  0x6c   :  { %2368 = vmatprep.subr.bf16.mxu0 %v3567_v2  ;;  %v3647_v2 = vld [vmem:[#allocation5 + $0x238] ss:$28 sps:$4 sm:$0xff]  }
  0x6e   :  { %2328 = vmatpush1.bf16.msra.mxu1 %v3569_v4  ;;  %v3652_v4 = vld [vmem:[#allocation5 + $0x96c] ss:$28 sps:$4 sm:$0xff]  }
  0x6f   :  { %2369 = vmatpush1.bf16.msra.mxu0 %v3570_v5  ;;  %2329 = vmatprep.subr.bf16.mxu1 %v3571_v6  ;;  %v3655_v5 = vld [vmem:[#allocation5 + $0x274] ss:$28 sps:$4 sm:$0xff]   ;;  %v3650_v6 = vld [vmem:[#allocation5 + $0x968] ss:$28 sps:$4 sm:$0xff]  }
  0x70   :  { %2370 = vmatprep.subr.bf16.mxu0 %v3573_v7  ;;  %v3653_v7 = vld [vmem:[#allocation5 + $0x270] ss:$28 sps:$4 sm:$0xff]  }
  0x72   :  { %2330 = vmatpush1.bf16.msra.mxu1 %v3575_v8  ;;  %v3658_v8 = vld [vmem:[#allocation5 + $0x9a4] ss:$28 sps:$4 sm:$0xff]  }
  0x73   :  { %2371 = vmatpush1.bf16.msra.mxu0 %v3576_v9  ;;  %2331 = vmatprep.subr.bf16.mxu1 %v3577_v10  ;;  %v3661_v9 = vld [vmem:[#allocation5 + $0x2ac] ss:$28 sps:$4 sm:$0xff]   ;;  %v3656_v10 = vld [vmem:[#allocation5 + $0x9a0] ss:$28 sps:$4 sm:$0xff]  }
  0x74   :  { %2372 = vmatprep.subr.bf16.mxu0 %v3579_v11  ;;  %v3659_v11 = vld [vmem:[#allocation5 + $0x2a8] ss:$28 sps:$4 sm:$0xff]  }
  0x76   :  { %2332 = vmatpush1.bf16.msra.mxu1 %v3581_v12  ;;  %v3664_v12 = vld [vmem:[#allocation5 + $0x9dc] ss:$28 sps:$4 sm:$0xff]  }
  0x77   :  { %2373 = vmatpush1.bf16.msra.mxu0 %v3582_v13  ;;  %2465 = vmatprep.subr.bf16.mxu1 %v3589_v15  ;;  %v3667_v13 = vld [vmem:[#allocation5 + $0x2e4] ss:$28 sps:$4 sm:$0xff]  }
  0x78   :  { %2383 = vmatprep.subr.bf16.mxu0 %v3586_v14  ;;  %v3662_v14 = vld [vmem:[#allocation5 + $0x9d8] ss:$28 sps:$4 sm:$0xff]   ;;  %v3665_v15 = vld [vmem:[#allocation5 + $0x2e0] ss:$28 sps:$4 sm:$0xff]  }
  0x79   :  { %2334 = vmatmul.mubr.bf16.vlgmr.msra.gmra.mrb[0].mxu1 %v4152_v17 }
  0x7a   :  { %2375 = vmatmul.mubr.bf16.vlgmr.msra.gmra.mrb[0].mxu0 %v4154_v18  ;;  %2466 = vmatpush1.bf16.msra.mxu1 %v3587_v19  ;;  %v3673_v19 = vld [vmem:[#allocation5 + $0x31c] ss:$28 sps:$4 sm:$0xff]  }
  0x7b   :  { %2384 = vmatpush1.bf16.msra.mxu0 %v3584_v16  ;;  %2467 = vmatprep.subr.bf16.mxu1 %v3595_v21  ;;  %v3670_v16 = vld [vmem:[#allocation5 + $0xa14] ss:$28 sps:$4 sm:$0xff]  }
  0x7c   :  { %2385 = vmatprep.subr.bf16.mxu0 %v3592_v20  ;;  %2497 = vmatprep.mubr.bf16.mxu1 %v4146_v62  ;;  %v3668_v20 = vld [vmem:[#allocation5 + $0xa10] ss:$28 sps:$4 sm:$0xff]   ;;  %v3671_v21 = vld [vmem:[#allocation5 + $0x318] ss:$28 sps:$4 sm:$0xff]  }
  0x7d   :  { %2415 = vmatprep.mubr.bf16.mxu0 %v4167_v51 }
  0x7e   :  { %2468 = vmatpush1.bf16.msra.mxu1 %v3593_v23  ;;  %v3679_v23 = vld [vmem:[#allocation5 + $0x354] ss:$28 sps:$4 sm:$0xff]  }
  0x7f   :  { %2386 = vmatpush1.bf16.msra.mxu0 %v3590_v22  ;;  %2469 = vmatprep.subr.bf16.mxu1 %v3601_v25  ;;  %v3676_v22 = vld [vmem:[#allocation5 + $0xa4c] ss:$28 sps:$4 sm:$0xff]  }
  0x80   :  { %2387 = vmatprep.subr.bf16.mxu0 %v3598_v24  ;;  %v3674_v24 = vld [vmem:[#allocation5 + $0xa48] ss:$28 sps:$4 sm:$0xff]   ;;  %v3677_v25 = vld [vmem:[#allocation5 + $0x350] ss:$28 sps:$4 sm:$0xff]  }
  0x82   :  { %2470 = vmatpush1.bf16.msra.mxu1 %v3599_v27  ;;  %v3686_v27 = vld [vmem:[#allocation5 + $0x38c] ss:$28 sps:$4 sm:$0xff]  }
  0x83   :  { %2388 = vmatpush1.bf16.msra.mxu0 %v3596_v26  ;;  %2471 = vmatprep.subr.bf16.mxu1 %v3607_v29  ;;  %v3683_v26 = vld [vmem:[#allocation5 + $0xa84] ss:$28 sps:$4 sm:$0xff]  }
  0x84   :  { %2389 = vmatprep.subr.bf16.mxu0 %v3604_v28  ;;  %v4172_v28 = vpack.c.bf16 %v4163_v44, %v4163_v44  ;;  %v3681_v29 = vld [vmem:[#allocation5 + $0xa80] ss:$28 sps:$4 sm:$0xff]   ;;  %v3701_v44 = vld [vmem:[#allocation5 + $0x46c] ss:$28 sps:$4 sm:$0xff]  }
  0x86   :  { %2472 = vmatpush1.bf16.msra.mxu1 %v3605_v31  ;;  %v3689_v31 = vld [vmem:[#allocation5 + $0x3c4] ss:$28 sps:$4 sm:$0xff]  }
  0x87   :  { %2390 = vmatpush1.bf16.msra.mxu0 %v3602_v30  ;;  %2473 = vmatprep.subr.bf16.mxu1 %v3613_v33  ;;  %v3684_v30 = vld [vmem:[#allocation5 + $0x388] ss:$28 sps:$4 sm:$0xff]   ;;  %v74_v33 = vcombine.high %v4159_v42, %v4159_v42 }
  0x88   :  { %2391 = vmatprep.subr.bf16.mxu0 %v3610_v32  ;;  %v3698_v32 = vld [vmem:[#allocation5 + $0xa8c] ss:$28 sps:$4 sm:$0xff]  }
  0x89   :  { %v3696_v42 = vld [vmem:[#allocation5 + $0xa88] ss:$28 sps:$4 sm:$0xff]  }
  0x8a   :  { %2474 = vmatpush1.bf16.msra.mxu1 %v3611_v35  ;;  %v3692_v35 = vld [vmem:[#allocation5 + $0x3fc] ss:$28 sps:$4 sm:$0xff]  }
  0x8b   :  { %2392 = vmatpush1.bf16.msra.mxu0 %v3608_v34  ;;  %2475 = vmatprep.subr.bf16.mxu1 %v3619_v37  ;;  %v3687_v34 = vld [vmem:[#allocation5 + $0x3c0] ss:$28 sps:$4 sm:$0xff]   ;;  %v88_v37 = vrot.slane %v74_v33, %v4142_v49 }
  0x8c   :  { %2393 = vmatprep.subr.bf16.mxu0 %v3616_v36  ;;  %v4079_v36 = vmov 0   ;;  %v3770_v33 = vld [vmem:[#allocation5 + $0x27c] ss:$28 sps:$4 sm:$0xff]  }
  0x8e   :  { %2476 = vmatpush1.bf16.msra.mxu1 %v3617_v39  ;;  %v3695_v39 = vld [vmem:[#allocation5 + $0x434] ss:$28 sps:$4 sm:$0xff]  }
  0x8f   :  { %2394 = vmatpush1.bf16.msra.mxu0 %v3614_v38  ;;  %2477 = vmatprep.subr.bf16.mxu1 %v3625_v41  ;;  %v3690_v38 = vld [vmem:[#allocation5 + $0x3f8] ss:$28 sps:$4 sm:$0xff]   ;;  %v3693_v41 = vld [vmem:[#allocation5 + $0x430] ss:$28 sps:$4 sm:$0xff]  }
  0x90   :  { %2395 = vmatprep.subr.bf16.mxu0 %v3622_v40  ;;  %v4181_v40 = vpack.c.bf16 %v88_v37, %v88_v37  ;;  %v3771_v37 = vld [vmem:[#allocation5 + $0x708] ss:$28 sps:$4 sm:$0xff]  }
  0x92   :  { %2478 = vmatpush1.bf16.msra.mxu1 %v3623_v46  ;;  %v3699_v46 = vld [vmem:[#allocation5 + $0x468] ss:$28 sps:$4 sm:$0xff]  }
  0x93   :  { %2396 = vmatpush1.bf16.msra.mxu0 %v3620_v45  ;;  %2479 = vmatprep.subr.bf16.mxu1 %v3631_v50  ;;  %v3704_v45 = vld [vmem:[#allocation5 + $0x14] ss:$28 sps:$4 sm:$0xff]   ;;  %v3705_v50 = vld [vmem:[#allocation5 + $0x4a0] ss:$28 sps:$4 sm:$0xff]  }
  0x94   :  { %2397 = vmatprep.subr.bf16.mxu0 %v3628_v48  ;;  %v3702_v48 = vld [vmem:[#allocation5 + $0x10] ss:$28 sps:$4 sm:$0xff]  }
  0x96   :  { %2480 = vmatpush1.bf16.msra.mxu1 %v3629_v53  ;;  %v3713_v53 = vld [vmem:[#allocation5 + $0x4dc] ss:$28 sps:$4 sm:$0xff]  }
  0x97   :  { %2398 = vmatpush1.bf16.msra.mxu0 %v3626_v52  ;;  %2481 = vmatprep.subr.bf16.mxu1 %v3637_v55  ;;  %v3710_v52 = vld [vmem:[#allocation5 + $0x4c] ss:$28 sps:$4 sm:$0xff]   ;;  %v3711_v55 = vld [vmem:[#allocation5 + $0x4d8] ss:$28 sps:$4 sm:$0xff]  }
  0x98   :  { %2399 = vmatprep.subr.bf16.mxu0 %v3634_v54  ;;  %v3708_v54 = vld [vmem:[#allocation5 + $0x48] ss:$28 sps:$4 sm:$0xff]  }
  0x9a   :  { %2482 = vmatpush1.bf16.msra.mxu1 %v3635_v57  ;;  %v3719_v57 = vld [vmem:[#allocation5 + $0x514] ss:$28 sps:$4 sm:$0xff]  }
  0x9b   :  { %2400 = vmatpush1.bf16.msra.mxu0 %v3632_v56  ;;  %2483 = vmatprep.subr.bf16.mxu1 %v3643_v59  ;;  %v3716_v56 = vld [vmem:[#allocation5 + $0x84] ss:$28 sps:$4 sm:$0xff]   ;;  %v3717_v59 = vld [vmem:[#allocation5 + $0x510] ss:$28 sps:$4 sm:$0xff]  }
  0x9c   :  { %2401 = vmatprep.subr.bf16.mxu0 %v3640_v58  ;;  %v3714_v58 = vld [vmem:[#allocation5 + $0x80] ss:$28 sps:$4 sm:$0xff]  }
  0x9e   :  { %2484 = vmatpush1.bf16.msra.mxu1 %v3641_v61  ;;  %v3725_v61 = vld [vmem:[#allocation5 + $0x54c] ss:$28 sps:$4 sm:$0xff]  }
  0x9f   :  { %2402 = vmatpush1.bf16.msra.mxu0 %v3638_v60  ;;  %2485 = vmatprep.subr.bf16.mxu1 %v3649_v0  ;;  %v3722_v60 = vld [vmem:[#allocation5 + $0xbc] ss:$28 sps:$4 sm:$0xff]   ;;  %v3723_v0 = vld [vmem:[#allocation5 + $0x548] ss:$28 sps:$4 sm:$0xff]  }
  0xa0   :  { %2403 = vmatprep.subr.bf16.mxu0 %v3646_v63  ;;  %v3720_v63 = vld [vmem:[#allocation5 + $0xb8] ss:$28 sps:$4 sm:$0xff]  }
  0xa2   :  { %2486 = vmatpush1.bf16.msra.mxu1 %v3647_v2  ;;  %v3731_v2 = vld [vmem:[#allocation5 + $0x584] ss:$28 sps:$4 sm:$0xff]  }
  0xa3   :  { %2404 = vmatpush1.bf16.msra.mxu0 %v3644_v1  ;;  %2487 = vmatprep.subr.bf16.mxu1 %v3655_v5  ;;  %v3728_v1 = vld [vmem:[#allocation5 + $0xf4] ss:$28 sps:$4 sm:$0xff]   ;;  %v3729_v5 = vld [vmem:[#allocation5 + $0x580] ss:$28 sps:$4 sm:$0xff]  }
  0xa4   :  { %2405 = vmatprep.subr.bf16.mxu0 %v3652_v4  ;;  %v3726_v4 = vld [vmem:[#allocation5 + $0xf0] ss:$28 sps:$4 sm:$0xff]  }
  0xa6   :  { %2488 = vmatpush1.bf16.msra.mxu1 %v3653_v7  ;;  %v3737_v7 = vld [vmem:[#allocation5 + $0x5bc] ss:$28 sps:$4 sm:$0xff]  }
  0xa7   :  { %2406 = vmatpush1.bf16.msra.mxu0 %v3650_v6  ;;  %2489 = vmatprep.subr.bf16.mxu1 %v3661_v9  ;;  %v3734_v6 = vld [vmem:[#allocation5 + $0x12c] ss:$28 sps:$4 sm:$0xff]   ;;  %v3735_v9 = vld [vmem:[#allocation5 + $0x5b8] ss:$28 sps:$4 sm:$0xff]  }
  0xa8   :  { %2407 = vmatprep.subr.bf16.mxu0 %v3658_v8  ;;  %v3732_v8 = vld [vmem:[#allocation5 + $0x128] ss:$28 sps:$4 sm:$0xff]  }
  0xaa   :  { %2490 = vmatpush1.bf16.msra.mxu1 %v3659_v11  ;;  %v3743_v11 = vld [vmem:[#allocation5 + $0x5f4] ss:$28 sps:$4 sm:$0xff]  }
  0xab   :  { %2408 = vmatpush1.bf16.msra.mxu0 %v3656_v10  ;;  %2491 = vmatprep.subr.bf16.mxu1 %v3667_v13  ;;  %v3740_v10 = vld [vmem:[#allocation5 + $0x164] ss:$28 sps:$4 sm:$0xff]   ;;  %v3741_v13 = vld [vmem:[#allocation5 + $0x5f0] ss:$28 sps:$4 sm:$0xff]  }
  0xac   :  { %2409 = vmatprep.subr.bf16.mxu0 %v3664_v12  ;;  %v3738_v12 = vld [vmem:[#allocation5 + $0x160] ss:$28 sps:$4 sm:$0xff]  }
  0xae   :  { %2492 = vmatpush1.bf16.msra.mxu1 %v3665_v15  ;;  %v3749_v15 = vld [vmem:[#allocation5 + $0x62c] ss:$28 sps:$4 sm:$0xff]  }
  0xaf   :  { %2410 = vmatpush1.bf16.msra.mxu0 %v3662_v14  ;;  %2493 = vmatprep.subr.bf16.mxu1 %v3673_v19  ;;  %v3746_v14 = vld [vmem:[#allocation5 + $0x19c] ss:$28 sps:$4 sm:$0xff]   ;;  %v3747_v19 = vld [vmem:[#allocation5 + $0x628] ss:$28 sps:$4 sm:$0xff]  }
  0xb0   :  { %2411 = vmatprep.subr.bf16.mxu0 %v3670_v16  ;;  %v3744_v16 = vld [vmem:[#allocation5 + $0x198] ss:$28 sps:$4 sm:$0xff]  }
  0xb2   :  { %2494 = vmatpush1.bf16.msra.mxu1 %v3671_v21  ;;  %v3755_v21 = vld [vmem:[#allocation5 + $0x664] ss:$28 sps:$4 sm:$0xff]  }
  0xb3   :  { %2412 = vmatpush1.bf16.msra.mxu0 %v3668_v20  ;;  %2495 = vmatprep.subr.bf16.mxu1 %v3679_v23  ;;  %v3752_v20 = vld [vmem:[#allocation5 + $0x1d4] ss:$28 sps:$4 sm:$0xff]   ;;  %v3753_v23 = vld [vmem:[#allocation5 + $0x660] ss:$28 sps:$4 sm:$0xff]  }
  0xb4   :  { %2413 = vmatprep.subr.bf16.mxu0 %v3676_v22  ;;  %v3750_v22 = vld [vmem:[#allocation5 + $0x1d0] ss:$28 sps:$4 sm:$0xff]  }
  0xb6   :  { %2496 = vmatpush1.bf16.msra.mxu1 %v3677_v25  ;;  %v3761_v25 = vld [vmem:[#allocation5 + $0x69c] ss:$28 sps:$4 sm:$0xff]  }
  0xb7   :  { %2414 = vmatpush1.bf16.msra.mxu0 %v3674_v24  ;;  %2506 = vmatprep.subr.bf16.mxu1 %v3686_v27  ;;  %v3758_v24 = vld [vmem:[#allocation5 + $0x20c] ss:$28 sps:$4 sm:$0xff]   ;;  %v3759_v27 = vld [vmem:[#allocation5 + $0x698] ss:$28 sps:$4 sm:$0xff]  }
  0xb8   :  { %2424 = vmatprep.subr.bf16.mxu0 %v3683_v26  ;;  %v3756_v26 = vld [vmem:[#allocation5 + $0x208] ss:$28 sps:$4 sm:$0xff]  }
  0xb9   :  { %2498 = vmatmul.mubr.bf16.vlgmr.msra.gmra.mrb[4].mxu1 %v4152_v17 }
  0xba   :  { %2416 = vmatmul.mubr.bf16.vlgmr.msra.gmra.mrb[0].mxu0 %v4172_v28  ;;  %2507 = vmatpush1.bf16.msra.mxu1 %v3684_v30  ;;  %v3767_v30 = vld [vmem:[#allocation5 + $0x6d4] ss:$28 sps:$4 sm:$0xff]  }
  0xbb   :  { %2425 = vmatpush1.bf16.msra.mxu0 %v3681_v29  ;;  %2508 = vmatprep.subr.bf16.mxu1 %v3689_v31  ;;  %v3764_v29 = vld [vmem:[#allocation5 + $0x244] ss:$28 sps:$4 sm:$0xff]  }
  0xbc   :  { %2456 = vmatprep.mubr.bf16.mxu0 %v4079_v36  ;;  %2588 = vmatprep.subr.bf16.mxu0 %v3698_v32  ;;  %v3762_v31 = vld [vmem:[#allocation5 + $0x240] ss:$28 sps:$4 sm:$0xff]   ;;  %v3765_v32 = vld [vmem:[#allocation5 + $0x6d0] ss:$28 sps:$4 sm:$0xff]  }
  0xbd   :  { %2538 = vmatprep.mubr.bf16.mxu1 %v4148_v3 }
  0xbe   :  { %2509 = vmatpush1.bf16.msra.mxu1 %v3687_v34  ;;  %v3773_v34 = vld [vmem:[#allocation5 + $0x70c] ss:$28 sps:$4 sm:$0xff]  }
  0xbf   :  { %2510 = vmatprep.subr.bf16.mxu1 %v3692_v35  ;;  %v3768_v35 = vld [vmem:[#allocation5 + $0x278] ss:$28 sps:$4 sm:$0xff]  }
  0xc2   :  { %2511 = vmatpush1.bf16.msra.mxu1 %v3690_v38  ;;  %v3776_v38 = vld [vmem:[#allocation5 + $0x2b4] ss:$28 sps:$4 sm:$0xff]  }
  0xc3   :  { %2512 = vmatprep.subr.bf16.mxu1 %v3695_v39  ;;  %v3779_v39 = vld [vmem:[#allocation5 + $0x744] ss:$28 sps:$4 sm:$0xff]  }
  0xc6   :  { %3361 = vmatmul.mubr.msk.bf16.vlgmr.msra.gmra.mrb[0].mxu0 %vm2297_vm0, %v4181_v40  ;;  %2513 = vmatpush1.bf16.msra.mxu1 %v3693_v41  ;;  %v3774_v41 = vld [vmem:[#allocation5 + $0x2b0] ss:$28 sps:$4 sm:$0xff]  }
  0xc7   :  { %2589 = vmatpush1.bf16.msra.mxu0 %v3696_v42  ;;  %2514 = vmatprep.subr.bf16.mxu1 %v3701_v44  ;;  %v3777_v42 = vld [vmem:[#allocation5 + $0x740] ss:$28 sps:$4 sm:$0xff]   ;;  %v3782_v44 = vld [vmem:[#allocation5 + $0x2ec] ss:$28 sps:$4 sm:$0xff]  }
  0xc8   :  { %2620 = vmatprep.mubr.bf16.mxu0 %v4079_v36  ;;  %2629 = vmatprep.subr.bf16.mxu0 %v3704_v45  ;;  %v3785_v45 = vld [vmem:[#allocation5 + $0x77c] ss:$28 sps:$4 sm:$0xff]  }
  0xca   :  { %2515 = vmatpush1.bf16.msra.mxu1 %v3699_v46  ;;  %v3780_v46 = vld [vmem:[#allocation5 + $0x2e8] ss:$28 sps:$4 sm:$0xff]  }
  0xcb   :  { %2516 = vmatprep.subr.bf16.mxu1 %v3707_v47  ;;  %v3783_v47 = vld [vmem:[#allocation5 + $0x778] ss:$28 sps:$4 sm:$0xff]  }
  0xce   :  { %3362 = vmatmul.mubr.msk.bf16.vlgmr.msra.gmra.mrb[4].mxu0 %vm2297_vm0, %v4181_v40  ;;  %2517 = vmatpush1.bf16.msra.mxu1 %v3705_v50  ;;  %v3791_v50 = vld [vmem:[#allocation5 + $0x7b4] ss:$28 sps:$4 sm:$0xff]  }
  0xcf   :  { %2630 = vmatpush1.bf16.msra.mxu0 %v3702_v48  ;;  %2518 = vmatprep.subr.bf16.mxu1 %v3713_v53  ;;  %v3788_v48 = vld [vmem:[#allocation5 + $0x324] ss:$28 sps:$4 sm:$0xff]   ;;  %v3789_v53 = vld [vmem:[#allocation5 + $0x7b0] ss:$28 sps:$4 sm:$0xff]  }
  0xd0   :  { %2631 = vmatprep.subr.bf16.mxu0 %v3710_v52  ;;  %2661 = vmatprep.mubr.bf16.mxu0 %v4146_v62  ;;  %v3786_v52 = vld [vmem:[#allocation5 + $0x320] ss:$28 sps:$4 sm:$0xff]  }
  0xd2   :  { %2519 = vmatpush1.bf16.msra.mxu1 %v3711_v55  ;;  %v3797_v55 = vld [vmem:[#allocation5 + $0x7ec] ss:$28 sps:$4 sm:$0xff]  }
  0xd3   :  { %2632 = vmatpush1.bf16.msra.mxu0 %v3708_v54  ;;  %2520 = vmatprep.subr.bf16.mxu1 %v3719_v57  ;;  %v3794_v54 = vld [vmem:[#allocation5 + $0x35c] ss:$28 sps:$4 sm:$0xff]   ;;  %v3795_v57 = vld [vmem:[#allocation5 + $0x7e8] ss:$28 sps:$4 sm:$0xff]  }
  0xd4   :  { %2633 = vmatprep.subr.bf16.mxu0 %v3716_v56  ;;  %v3792_v56 = vld [vmem:[#allocation5 + $0x358] ss:$28 sps:$4 sm:$0xff]  }
  0xd6   :  { %2521 = vmatpush1.bf16.msra.mxu1 %v3717_v59  ;;  %v3803_v59 = vld [vmem:[#allocation5 + $0x824] ss:$28 sps:$4 sm:$0xff]  }
  0xd7   :  { %2634 = vmatpush1.bf16.msra.mxu0 %v3714_v58  ;;  %2522 = vmatprep.subr.bf16.mxu1 %v3725_v61  ;;  %v3800_v58 = vld [vmem:[#allocation5 + $0x394] ss:$28 sps:$4 sm:$0xff]   ;;  %v3801_v61 = vld [vmem:[#allocation5 + $0x820] ss:$28 sps:$4 sm:$0xff]  }
  0xd8   :  { %2635 = vmatprep.subr.bf16.mxu0 %v3722_v60  ;;  %v3798_v60 = vld [vmem:[#allocation5 + $0x390] ss:$28 sps:$4 sm:$0xff]  }
  0xda   :  { %2523 = vmatpush1.bf16.msra.mxu1 %v3723_v0  ;;  %v3809_v0 = vld [vmem:[#allocation5 + $0x85c] ss:$28 sps:$4 sm:$0xff]  }
  0xdb   :  { %2636 = vmatpush1.bf16.msra.mxu0 %v3720_v63  ;;  %2524 = vmatprep.subr.bf16.mxu1 %v3731_v2  ;;  %v3806_v63 = vld [vmem:[#allocation5 + $0x3cc] ss:$28 sps:$4 sm:$0xff]   ;;  %v3807_v2 = vld [vmem:[#allocation5 + $0x858] ss:$28 sps:$4 sm:$0xff]  }
  0xdc   :  { %2637 = vmatprep.subr.bf16.mxu0 %v3728_v1  ;;  %v3804_v1 = vld [vmem:[#allocation5 + $0x3c8] ss:$28 sps:$4 sm:$0xff]  }
  0xde   :  { %2525 = vmatpush1.bf16.msra.mxu1 %v3729_v5  ;;  %v3815_v5 = vld [vmem:[#allocation5 + $0x894] ss:$28 sps:$4 sm:$0xff]  }
  0xdf   :  { %2638 = vmatpush1.bf16.msra.mxu0 %v3726_v4  ;;  %2526 = vmatprep.subr.bf16.mxu1 %v3737_v7  ;;  %v3812_v4 = vld [vmem:[#allocation5 + $0x404] ss:$28 sps:$4 sm:$0xff]   ;;  %v3813_v7 = vld [vmem:[#allocation5 + $0x890] ss:$28 sps:$4 sm:$0xff]  }
  0xe0   :  { %2639 = vmatprep.subr.bf16.mxu0 %v3734_v6  ;;  %v3810_v6 = vld [vmem:[#allocation5 + $0x400] ss:$28 sps:$4 sm:$0xff]  }
  0xe2   :  { %2527 = vmatpush1.bf16.msra.mxu1 %v3735_v9  ;;  %v3821_v9 = vld [vmem:[#allocation5 + $0x8cc] ss:$28 sps:$4 sm:$0xff]  }
  0xe3   :  { %2640 = vmatpush1.bf16.msra.mxu0 %v3732_v8  ;;  %2528 = vmatprep.subr.bf16.mxu1 %v3743_v11  ;;  %v3818_v8 = vld [vmem:[#allocation5 + $0x43c] ss:$28 sps:$4 sm:$0xff]   ;;  %v3819_v11 = vld [vmem:[#allocation5 + $0x8c8] ss:$28 sps:$4 sm:$0xff]  }
  0xe4   :  { %2641 = vmatprep.subr.bf16.mxu0 %v3740_v10  ;;  %v3816_v10 = vld [vmem:[#allocation5 + $0x438] ss:$28 sps:$4 sm:$0xff]  }
  0xe6   :  { %2529 = vmatpush1.bf16.msra.mxu1 %v3741_v13  ;;  %v3827_v13 = vld [vmem:[#allocation5 + $0x904] ss:$28 sps:$4 sm:$0xff]  }
  0xe7   :  { %2642 = vmatpush1.bf16.msra.mxu0 %v3738_v12  ;;  %2530 = vmatprep.subr.bf16.mxu1 %v3749_v15  ;;  %v3824_v12 = vld [vmem:[#allocation5 + $0x474] ss:$28 sps:$4 sm:$0xff]   ;;  %v3825_v15 = vld [vmem:[#allocation5 + $0x900] ss:$28 sps:$4 sm:$0xff]  }
  0xe8   :  { %2643 = vmatprep.subr.bf16.mxu0 %v3746_v14  ;;  %v3822_v14 = vld [vmem:[#allocation5 + $0x470] ss:$28 sps:$4 sm:$0xff]  }
  0xea   :  { %2531 = vmatpush1.bf16.msra.mxu1 %v3747_v19  ;;  %v3833_v19 = vld [vmem:[#allocation5 + $0x93c] ss:$28 sps:$4 sm:$0xff]  }
  0xeb   :  { %2644 = vmatpush1.bf16.msra.mxu0 %v3744_v16  ;;  %2532 = vmatprep.subr.bf16.mxu1 %v3755_v21  ;;  %v3830_v16 = vld [vmem:[#allocation5 + $0x4ac] ss:$28 sps:$4 sm:$0xff]   ;;  %v3831_v21 = vld [vmem:[#allocation5 + $0x938] ss:$28 sps:$4 sm:$0xff]  }
  0xec   :  { %2645 = vmatprep.subr.bf16.mxu0 %v3752_v20  ;;  %v3828_v20 = vld [vmem:[#allocation5 + $0x4a8] ss:$28 sps:$4 sm:$0xff]  }
  0xee   :  { %2533 = vmatpush1.bf16.msra.mxu1 %v3753_v23  ;;  %v3839_v23 = vld [vmem:[#allocation5 + $0x974] ss:$28 sps:$4 sm:$0xff]  }
  0xef   :  { %2646 = vmatpush1.bf16.msra.mxu0 %v3750_v22  ;;  %2534 = vmatprep.subr.bf16.mxu1 %v3761_v25  ;;  %v3836_v22 = vld [vmem:[#allocation5 + $0x4e4] ss:$28 sps:$4 sm:$0xff]   ;;  %v3837_v25 = vld [vmem:[#allocation5 + $0x970] ss:$28 sps:$4 sm:$0xff]  }
  0xf0   :  { %2647 = vmatprep.subr.bf16.mxu0 %v3758_v24  ;;  %v3834_v24 = vld [vmem:[#allocation5 + $0x4e0] ss:$28 sps:$4 sm:$0xff]  }
  0xf2   :  { %2535 = vmatpush1.bf16.msra.mxu1 %v3759_v27  ;;  %v3845_v27 = vld [vmem:[#allocation5 + $0x9ac] ss:$28 sps:$4 sm:$0xff]  }
  0xf3   :  { %2648 = vmatpush1.bf16.msra.mxu0 %v3756_v26  ;;  %2536 = vmatprep.subr.bf16.mxu1 %v3767_v30  ;;  %v3842_v26 = vld [vmem:[#allocation5 + $0x51c] ss:$28 sps:$4 sm:$0xff]   ;;  %v3843_v30 = vld [vmem:[#allocation5 + $0x9a8] ss:$28 sps:$4 sm:$0xff]  }
  0xf4   :  { %2649 = vmatprep.subr.bf16.mxu0 %v3764_v29  ;;  %v3840_v29 = vld [vmem:[#allocation5 + $0x518] ss:$28 sps:$4 sm:$0xff]  }
  0xf6   :  { %2537 = vmatpush1.bf16.msra.mxu1 %v3765_v32  ;;  %v3851_v32 = vld [vmem:[#allocation5 + $0x9e4] ss:$28 sps:$4 sm:$0xff]  }
  0xf7   :  { %2650 = vmatpush1.bf16.msra.mxu0 %v3762_v31  ;;  %2547 = vmatprep.subr.bf16.mxu1 %v3773_v34  ;;  %v3848_v31 = vld [vmem:[#allocation5 + $0x554] ss:$28 sps:$4 sm:$0xff]   ;;  %v3849_v34 = vld [vmem:[#allocation5 + $0x9e0] ss:$28 sps:$4 sm:$0xff]  }
  0xf8   :  { %2651 = vmatprep.subr.bf16.mxu0 %v3770_v33  ;;  %v3846_v33 = vld [vmem:[#allocation5 + $0x550] ss:$28 sps:$4 sm:$0xff]  }
  0xf9   :  { %2539 = vmatmul.mubr.bf16.vlgmr.msra.gmra.mrb[4].mxu1 %v4154_v18 }
  0xfa   :  { %2548 = vmatpush1.bf16.msra.mxu1 %v3771_v37  ;;  %2579 = vmatprep.mubr.bf16.mxu1 %v4167_v51  ;;  %v3857_v37 = vld [vmem:[#allocation5 + $0xa1c] ss:$28 sps:$4 sm:$0xff]  }
  0xfb   :  { %2652 = vmatpush1.bf16.msra.mxu0 %v3768_v35  ;;  %2549 = vmatprep.subr.bf16.mxu1 %v3779_v39  ;;  %v3854_v35 = vld [vmem:[#allocation5 + $0x58c] ss:$28 sps:$4 sm:$0xff]   ;;  %v3855_v39 = vld [vmem:[#allocation5 + $0xa18] ss:$28 sps:$4 sm:$0xff]  }
  0xfc   :  { %2653 = vmatprep.subr.bf16.mxu0 %v3776_v38  ;;  %v3852_v38 = vld [vmem:[#allocation5 + $0x588] ss:$28 sps:$4 sm:$0xff]  }
  0xfe   :  { %2550 = vmatpush1.bf16.msra.mxu1 %v3777_v42  ;;  %v3863_v42 = vld [vmem:[#allocation5 + $0xa54] ss:$28 sps:$4 sm:$0xff]  }
  0xff   :  { %2654 = vmatpush1.bf16.msra.mxu0 %v3774_v41  ;;  %2551 = vmatprep.subr.bf16.mxu1 %v3785_v45  ;;  %v3860_v41 = vld [vmem:[#allocation5 + $0x5c4] ss:$28 sps:$4 sm:$0xff]   ;;  %v3861_v45 = vld [vmem:[#allocation5 + $0xa50] ss:$28 sps:$4 sm:$0xff]  }
 0x100   :  { %2655 = vmatprep.subr.bf16.mxu0 %v3782_v44  ;;  %v3858_v44 = vld [vmem:[#allocation5 + $0x5c0] ss:$28 sps:$4 sm:$0xff]  }
 0x102   :  { %2552 = vmatpush1.bf16.msra.mxu1 %v3783_v47  ;;  %v3867_v47 = vld [vmem:[#allocation5 + $0x1d8] ss:$28 sps:$4 sm:$0xff]  }
 0x103   :  { %2656 = vmatpush1.bf16.msra.mxu0 %v3780_v46  ;;  %2553 = vmatprep.subr.bf16.mxu1 %v3791_v50  ;;  %v3866_v46 = vld [vmem:[#allocation5 + $0x5fc] ss:$28 sps:$4 sm:$0xff]  }
 0x104   :  { %2657 = vmatprep.subr.bf16.mxu0 %v3788_v48  ;;  %v3864_v48 = vld [vmem:[#allocation5 + $0x5f8] ss:$28 sps:$4 sm:$0xff]  }
 0x105   :  { %v3868_v50 = vld [vmem:[#allocation5 + $0x18] ss:$28 sps:$4 sm:$0xff]  }
 0x106   :  { %2554 = vmatpush1.bf16.msra.mxu1 %v3789_v53  ;;  %v3872_v53 = vld [vmem:[#allocation5 + $0x210] ss:$28 sps:$4 sm:$0xff]  }
 0x107   :  { %2658 = vmatpush1.bf16.msra.mxu0 %v3786_v52  ;;  %2555 = vmatprep.subr.bf16.mxu1 %v3797_v55  ;;  %v3871_v52 = vld [vmem:[#allocation5 + $0x634] ss:$28 sps:$4 sm:$0xff]  }
 0x108   :  { %2659 = vmatprep.subr.bf16.mxu0 %v3794_v54  ;;  %v3869_v54 = vld [vmem:[#allocation5 + $0x630] ss:$28 sps:$4 sm:$0xff]  }
 0x109   :  { %v3873_v55 = vld [vmem:[#allocation5 + $0x50] ss:$28 sps:$4 sm:$0xff]  }
 0x10a   :  { %2556 = vmatpush1.bf16.msra.mxu1 %v3795_v57  ;;  %v3877_v57 = vld [vmem:[#allocation5 + $0x248] ss:$28 sps:$4 sm:$0xff]  }
 0x10b   :  { %2660 = vmatpush1.bf16.msra.mxu0 %v3792_v56  ;;  %2557 = vmatprep.subr.bf16.mxu1 %v3803_v59  ;;  %v3876_v56 = vld [vmem:[#allocation5 + $0x66c] ss:$28 sps:$4 sm:$0xff]  }
 0x10c   :  { %2670 = vmatprep.subr.bf16.mxu0 %v3800_v58  ;;  %v3874_v58 = vld [vmem:[#allocation5 + $0x668] ss:$28 sps:$4 sm:$0xff]  }
 0x10d   :  { %v3878_v59 = vld [vmem:[#allocation5 + $0x88] ss:$28 sps:$4 sm:$0xff]  }
 0x10e   :  { %2662 = vmatmul.mubr.bf16.vlgmr.msra.gmra.mrb[8].mxu0 %v4152_v17  ;;  %2558 = vmatpush1.bf16.msra.mxu1 %v3801_v61  ;;  %v3882_v61 = vld [vmem:[#allocation5 + $0x280] ss:$28 sps:$4 sm:$0xff]  }
 0x10f   :  { %2671 = vmatpush1.bf16.msra.mxu0 %v3798_v60  ;;  %2559 = vmatprep.subr.bf16.mxu1 %v3809_v0  ;;  %v3881_v60 = vld [vmem:[#allocation5 + $0x6a4] ss:$28 sps:$4 sm:$0xff]  }
 0x110   :  { %2672 = vmatprep.subr.bf16.mxu0 %v3806_v63  ;;  %2702 = vmatprep.mubr.bf16.mxu0 %v4148_v3  ;;  %v3879_v63 = vld [vmem:[#allocation5 + $0x6a0] ss:$28 sps:$4 sm:$0xff]  }
 0x111   :  { %v3883_v0 = vld [vmem:[#allocation5 + $0xc0] ss:$28 sps:$4 sm:$0xff]  }
 0x112   :  { %2560 = vmatpush1.bf16.msra.mxu1 %v3807_v2  ;;  %v3887_v2 = vld [vmem:[#allocation5 + $0x2b8] ss:$28 sps:$4 sm:$0xff]  }
 0x113   :  { %2673 = vmatpush1.bf16.msra.mxu0 %v3804_v1  ;;  %2561 = vmatprep.subr.bf16.mxu1 %v3815_v5  ;;  %v3886_v1 = vld [vmem:[#allocation5 + $0x6dc] ss:$28 sps:$4 sm:$0xff]   ;;  %v3891_v5 = vld [vmem:[#allocation5 + $0x714] ss:$28 sps:$4 sm:$0xff]  }
 0x114   :  { %2674 = vmatprep.subr.bf16.mxu0 %v3812_v4  ;;  %v3884_v4 = vld [vmem:[#allocation5 + $0x6d8] ss:$28 sps:$4 sm:$0xff]  }
 0x116   :  { %2562 = vmatpush1.bf16.msra.mxu1 %v3813_v7  ;;  %v3889_v7 = vld [vmem:[#allocation5 + $0x710] ss:$28 sps:$4 sm:$0xff]  }
 0x117   :  { %2675 = vmatpush1.bf16.msra.mxu0 %v3810_v6  ;;  %2563 = vmatprep.subr.bf16.mxu1 %v3821_v9  ;;  %v3892_v6 = vld [vmem:[#allocation5 + $0x2f0] ss:$28 sps:$4 sm:$0xff]  }
 0x118   :  { %2676 = vmatprep.subr.bf16.mxu0 %v3818_v8  ;;  %v3893_v8 = vld [vmem:[#allocation5 + $0x130] ss:$28 sps:$4 sm:$0xff]  }
 0x119   :  { %v3896_v9 = vld [vmem:[#allocation5 + $0x74c] ss:$28 sps:$4 sm:$0xff]  }
 0x11a   :  { %2564 = vmatpush1.bf16.msra.mxu1 %v3819_v11 }
 0x11b   :  { %2677 = vmatpush1.bf16.msra.mxu0 %v3816_v10  ;;  %2565 = vmatprep.subr.bf16.mxu1 %v3827_v13  ;;  %v3897_v10 = vld [vmem:[#allocation5 + $0x328] ss:$28 sps:$4 sm:$0xff]  }
 0x11c   :  { %2678 = vmatprep.subr.bf16.mxu0 %v3824_v12 }
 0x11e   :  { %2566 = vmatpush1.bf16.msra.mxu1 %v3825_v15  ;;  %v3898_v15 = vld [vmem:[#allocation5 + $0x168] ss:$28 sps:$4 sm:$0xff]  }
 0x11f   :  { %2679 = vmatpush1.bf16.msra.mxu0 %v3822_v14  ;;  %2567 = vmatprep.subr.bf16.mxu1 %v3833_v19  ;;  %v3894_v14 = vld [vmem:[#allocation5 + $0x748] ss:$28 sps:$4 sm:$0xff]  }
 0x120   :  { %2680 = vmatprep.subr.bf16.mxu0 %v3830_v16  ;;  %v3901_v19 = vld [vmem:[#allocation5 + $0x784] ss:$28 sps:$4 sm:$0xff]  }
 0x122   :  { %2568 = vmatpush1.bf16.msra.mxu1 %v3831_v21  ;;  %v3899_v21 = vld [vmem:[#allocation5 + $0x780] ss:$28 sps:$4 sm:$0xff]  }
 0x123   :  { %2681 = vmatpush1.bf16.msra.mxu0 %v3828_v20  ;;  %2569 = vmatprep.subr.bf16.mxu1 %v3839_v23  ;;  %v3902_v20 = vld [vmem:[#allocation5 + $0x360] ss:$28 sps:$4 sm:$0xff]  }
 0x124   :  { %2682 = vmatprep.subr.bf16.mxu0 %v3836_v22  ;;  %v3903_v22 = vld [vmem:[#allocation5 + $0x1a0] ss:$28 sps:$4 sm:$0xff]  }
 0x125   :  { %v3906_v23 = vld [vmem:[#allocation5 + $0x7bc] ss:$28 sps:$4 sm:$0xff]  }
 0x126   :  { %2570 = vmatpush1.bf16.msra.mxu1 %v3837_v25  ;;  %v3904_v25 = vld [vmem:[#allocation5 + $0x7b8] ss:$28 sps:$4 sm:$0xff]  }
 0x127   :  { %2683 = vmatpush1.bf16.msra.mxu0 %v3834_v24  ;;  %2571 = vmatprep.subr.bf16.mxu1 %v3845_v27  ;;  %v3907_v24 = vld [vmem:[#allocation5 + $0x558] ss:$28 sps:$4 sm:$0xff]  }
 0x128   :  { %2684 = vmatprep.subr.bf16.mxu0 %v3842_v26  ;;  %v3908_v26 = vld [vmem:[#allocation5 + $0x398] ss:$28 sps:$4 sm:$0xff]  }
 0x129   :  { %v3911_v27 = vld [vmem:[#allocation5 + $0x7f4] ss:$28 sps:$4 sm:$0xff]  }
 0x12a   :  { %2572 = vmatpush1.bf16.msra.mxu1 %v3843_v30  ;;  %v3909_v30 = vld [vmem:[#allocation5 + $0x7f0] ss:$28 sps:$4 sm:$0xff]  }
 0x12b   :  { %2685 = vmatpush1.bf16.msra.mxu0 %v3840_v29  ;;  %2573 = vmatprep.subr.bf16.mxu1 %v3851_v32  ;;  %v3912_v29 = vld [vmem:[#allocation5 + $0x590] ss:$28 sps:$4 sm:$0xff]  }
 0x12c   :  { %2686 = vmatprep.subr.bf16.mxu0 %v3848_v31  ;;  %v3913_v31 = vld [vmem:[#allocation5 + $0x3d0] ss:$28 sps:$4 sm:$0xff]  }
 0x12d   :  { %v3916_v32 = vld [vmem:[#allocation5 + $0x82c] ss:$28 sps:$4 sm:$0xff]  }
 0x12e   :  { %2574 = vmatpush1.bf16.msra.mxu1 %v3849_v34  ;;  %v3914_v34 = vld [vmem:[#allocation5 + $0x828] ss:$28 sps:$4 sm:$0xff]  }
 0x12f   :  { %2687 = vmatpush1.bf16.msra.mxu0 %v3846_v33  ;;  %2575 = vmatprep.subr.bf16.mxu1 %v3857_v37  ;;  %v3917_v33 = vld [vmem:[#allocation5 + $0x5c8] ss:$28 sps:$4 sm:$0xff]  }
 0x130   :  { %2688 = vmatprep.subr.bf16.mxu0 %v3854_v35  ;;  %v3918_v35 = vld [vmem:[#allocation5 + $0x408] ss:$28 sps:$4 sm:$0xff]  }
 0x131   :  { %v3921_v37 = vld [vmem:[#allocation5 + $0x864] ss:$28 sps:$4 sm:$0xff]  }
 0x132   :  { %2576 = vmatpush1.bf16.msra.mxu1 %v3855_v39  ;;  %v3923_v39 = vld [vmem:[#allocation5 + $0x440] ss:$28 sps:$4 sm:$0xff]  }
 0x133   :  { %2689 = vmatpush1.bf16.msra.mxu0 %v3852_v38  ;;  %2577 = vmatprep.subr.bf16.mxu1 %v3863_v42  ;;  %v3922_v38 = vld [vmem:[#allocation5 + $0x600] ss:$28 sps:$4 sm:$0xff]   ;;  %v3927_v42 = vld [vmem:[#allocation5 + $0x638] ss:$28 sps:$4 sm:$0xff]  }
 0x134   :  { %2690 = vmatprep.subr.bf16.mxu0 %v3860_v41  ;;  %v3926_v41 = vld [vmem:[#allocation5 + $0x89c] ss:$28 sps:$4 sm:$0xff]  }
 0x136   :  { %2578 = vmatpush1.bf16.msra.mxu1 %v3861_v45  ;;  %v3931_v45 = vld [vmem:[#allocation5 + $0x8d4] ss:$28 sps:$4 sm:$0xff]  }
 0x137   :  { %2691 = vmatpush1.bf16.msra.mxu0 %v3858_v44  ;;  %3365 = vmatprep.subr.bf16.mxu1 %v3867_v47  ;;  %v3924_v44 = vld [vmem:[#allocation5 + $0x898] ss:$28 sps:$4 sm:$0xff]   ;;  %v3929_v47 = vld [vmem:[#allocation5 + $0x8d0] ss:$28 sps:$4 sm:$0xff]  }
 0x138   :  { %2692 = vmatprep.subr.bf16.mxu0 %v3866_v46  ;;  %v3932_v46 = vld [vmem:[#allocation5 + $0x670] ss:$28 sps:$4 sm:$0xff]  }
 0x139   :  { %2580 = vmatmul.mubr.bf16.vlgmr.msra.gmra.mrb[4].mxu1 %v4172_v28 }
 0x13a   :  { %3366 = vmatpush3.bf16.msra.mxu1 %v3868_v50  ;;  %2825 = vmatprep.mubr.bf16.mxu1 %v4146_v62  ;;  %v3888_v62 = vld [vmem:[#allocation5 + $0xf8] ss:$28 sps:$4 sm:$0xff]   ;;  %v3936_v50 = vld [vmem:[#allocation5 + $0x90c] ss:$28 sps:$4 sm:$0xff]  }
 0x13b   :  { %2693 = vmatpush1.bf16.msra.mxu0 %v3864_v48  ;;  %3367 = vmatprep.subr.bf16.mxu1 %v3872_v53  ;;  %v3933_v48 = vld [vmem:[#allocation5 + $0x4b0] ss:$28 sps:$4 sm:$0xff]   ;;  %v3934_v53 = vld [vmem:[#allocation5 + $0x908] ss:$28 sps:$4 sm:$0xff]  }
 0x13c   :  { %2694 = vmatprep.subr.bf16.mxu0 %v3871_v52  ;;  %v3937_v52 = vld [vmem:[#allocation5 + $0x6a8] ss:$28 sps:$4 sm:$0xff]  }
 0x13e   :  { %3368 = vmatpush3.bf16.msra.mxu1 %v3873_v55  ;;  %v3941_v55 = vld [vmem:[#allocation5 + $0x944] ss:$28 sps:$4 sm:$0xff]  }
 0x13f   :  { %2695 = vmatpush1.bf16.msra.mxu0 %v3869_v54  ;;  %3369 = vmatprep.subr.bf16.mxu1 %v3877_v57  ;;  %v3938_v54 = vld [vmem:[#allocation5 + $0x4e8] ss:$28 sps:$4 sm:$0xff]   ;;  %v3939_v57 = vld [vmem:[#allocation5 + $0x940] ss:$28 sps:$4 sm:$0xff]  }
 0x140   :  { %2696 = vmatprep.subr.bf16.mxu0 %v3876_v56  ;;  %v3942_v56 = vld [vmem:[#allocation5 + $0x6e0] ss:$28 sps:$4 sm:$0xff]  }
 0x142   :  { %3370 = vmatpush3.bf16.msra.mxu1 %v3878_v59  ;;  %v3946_v59 = vld [vmem:[#allocation5 + $0x97c] ss:$28 sps:$4 sm:$0xff]  }
 0x143   :  { %2697 = vmatpush1.bf16.msra.mxu0 %v3874_v58  ;;  %3371 = vmatprep.subr.bf16.mxu1 %v3882_v61  ;;  %v3943_v58 = vld [vmem:[#allocation5 + $0x520] ss:$28 sps:$4 sm:$0xff]   ;;  %v3944_v61 = vld [vmem:[#allocation5 + $0x978] ss:$28 sps:$4 sm:$0xff]  }
 0x144   :  { %2698 = vmatprep.subr.bf16.mxu0 %v3881_v60  ;;  %v3947_v60 = vld [vmem:[#allocation5 + $0x8d8] ss:$28 sps:$4 sm:$0xff]  }
 0x146   :  { %3372 = vmatpush3.bf16.msra.mxu1 %v3883_v0  ;;  %v3951_v0 = vld [vmem:[#allocation5 + $0x9b4] ss:$28 sps:$4 sm:$0xff]  }
 0x147   :  { %2699 = vmatpush1.bf16.msra.mxu0 %v3879_v63  ;;  %3373 = vmatprep.subr.bf16.mxu1 %v3887_v2  ;;  %v3948_v63 = vld [vmem:[#allocation5 + $0x718] ss:$28 sps:$4 sm:$0xff]   ;;  %v3949_v2 = vld [vmem:[#allocation5 + $0x9b0] ss:$28 sps:$4 sm:$0xff]  }
 0x148   :  { %2700 = vmatprep.subr.bf16.mxu0 %v3886_v1  ;;  %v3952_v1 = vld [vmem:[#allocation5 + $0x910] ss:$28 sps:$4 sm:$0xff]  }
 0x14a   :  { %3374 = vmatpush3.bf16.msra.mxu1 %v3888_v62  ;;  %v3956_v62 = vld [vmem:[#allocation5 + $0x9ec] ss:$28 sps:$4 sm:$0xff]  }
 0x14b   :  { %2701 = vmatpush1.bf16.msra.mxu0 %v3884_v4  ;;  %3375 = vmatprep.subr.bf16.mxu1 %v3892_v6  ;;  %v3953_v4 = vld [vmem:[#allocation5 + $0x750] ss:$28 sps:$4 sm:$0xff]   ;;  %v3954_v6 = vld [vmem:[#allocation5 + $0x9e8] ss:$28 sps:$4 sm:$0xff]  }
 0x14c   :  { %2711 = vmatprep.subr.bf16.mxu0 %v3891_v5  ;;  %v4195_v11 = vpop.f32.mrb[0].mxu1  ;;  %v3957_v5 = vld [vmem:[#allocation5 + $0x948] ss:$28 sps:$4 sm:$0xff]  }
 0x14d   :  { %v4198_v12 = vpop.f32.mrb[1].mxu1 }
 0x14e   :  { %2703 = vmatmul.mubr.bf16.vlgmr.msra.gmra.mrb[8].mxu0 %v4154_v18  ;;  %3376 = vmatpush3.bf16.msra.mxu1 %v3893_v8  ;;  %v2339_v13 = vpop.f32.mrb[2].mxu1  ;;  %v3961_v8 = vld [vmem:[#allocation5 + $0xa24] ss:$28 sps:$4 sm:$0xff]  }
 0x14f   :  { %2712 = vmatpush1.bf16.msra.mxu0 %v3889_v7  ;;  %v2340_v16 = vpop.f32.mrb[3].mxu1  ;;  %3377 = vmatprep.subr.bf16.mxu1 %v3897_v10  ;;  %v3958_v7 = vld [vmem:[#allocation5 + $0x788] ss:$28 sps:$4 sm:$0xff]   ;;  %v3963_v10 = vld [vmem:[#allocation5 + $0x7c0] ss:$28 sps:$4 sm:$0xff]  }
 0x150   :  { %2713 = vmatprep.subr.bf16.mxu0 %v3896_v9  ;;  %2743 = vmatprep.mubr.bf16.mxu0 %v4167_v51  ;;  %v3962_v9 = vld [vmem:[#allocation5 + $0x980] ss:$28 sps:$4 sm:$0xff]   ;;  %v3971_v16 = vld [vmem:[#allocation5 + $0xa94] ss:$28 sps:$4 sm:$0xff]  }
 0x151   :  { %v3966_v13 = vld [vmem:[#allocation5 + $0xa5c] ss:$28 sps:$4 sm:$0xff]  }
 0x152   :  { %3378 = vmatpush3.bf16.msra.mxu1 %v3898_v15  ;;  %v3964_v15 = vld [vmem:[#allocation5 + $0xa58] ss:$28 sps:$4 sm:$0xff]  }
 0x153   :  { %2714 = vmatpush1.bf16.msra.mxu0 %v3894_v14  ;;  %3379 = vmatprep.subr.bf16.mxu1 %v3902_v20  ;;  %v3967_v14 = vld [vmem:[#allocation5 + $0x9b8] ss:$28 sps:$4 sm:$0xff]   ;;  %v3969_v20 = vld [vmem:[#allocation5 + $0xa90] ss:$28 sps:$4 sm:$0xff]  }
 0x154   :  { %2715 = vmatprep.subr.bf16.mxu0 %v3901_v19  ;;  %v3972_v19 = vld [vmem:[#allocation5 + $0x9f0] ss:$28 sps:$4 sm:$0xff]  }
 0x156   :  { %3380 = vmatpush3.bf16.msra.mxu1 %v3903_v22  ;;  %v3974_v22 = vld [vmem:[#allocation5 + $0xa28] ss:$28 sps:$4 sm:$0xff]  }
 0x157   :  { %2716 = vmatpush1.bf16.msra.mxu0 %v3899_v21  ;;  %3387 = vmatprep.subr.bf16.mxu1 %v3907_v24  ;;  %v3973_v21 = vld [vmem:[#allocation5 + $0x830] ss:$28 sps:$4 sm:$0xff]   ;;  %v500_v24 = vsub.s32 0, %v4139_v43 }
 0x158   :  { %2717 = vmatprep.subr.bf16.mxu0 %v3906_v23  ;;  %v3975_v23 = vld [vmem:[#allocation5 + $0x868] ss:$28 sps:$4 sm:$0xff]  }
 0x159   :  { %2826 = vmatmul.mubr.bf16.vlgmr.msra.gmra.mrb[8].mxu1 %v4152_v17  ;;  %v3919_v17 = vld [vmem:[#allocation5 + $0x860] ss:$28 sps:$4 sm:$0xff]  }
 0x15a   :  { %3388 = vmatpush3.bf16.msra.mxu1 %v3908_v26  ;;  %2865 = vmatprep.mubr.bf16.mxu1 %v4148_v3  ;;  %v3928_v3 = vld [vmem:[#allocation5 + $0x478] ss:$28 sps:$4 sm:$0xff]  }
 0x15b   :  { %2718 = vmatpush1.bf16.msra.mxu0 %v3904_v25  ;;  %3389 = vmatprep.subr.bf16.mxu1 %v3912_v29  ;;  %v3976_v25 = vld [vmem:[#allocation5 + $0xa60] ss:$28 sps:$4 sm:$0xff]   ;;  %v4080_v29 = vmov 0.0  }
 0x15c   :  { %2719 = vmatprep.subr.bf16.mxu0 %v3911_v27  ;;  %v4208_v26 = vld [vmem:[#allocation7] sm:$0x7f]  ;;  %v504_v27 = vsub.s32 1, %v4139_v43 }
 0x15e   :  { %3390 = vmatpush3.bf16.msra.mxu1 %v3913_v31  ;;  %v501_v31 = vrot.slane %v4208_v26, %v500_v24 }
 0x15f   :  { %2720 = vmatpush1.bf16.msra.mxu0 %v3909_v30  ;;  %3391 = vmatprep.subr.bf16.mxu1 %v3917_v33  ;;  %v3977_v30 = vld [vmem:[#allocation5 + $0x8a0] ss:$28 sps:$4 sm:$0xff]   ;;  %v3978_v33 = vld [vmem:[#allocation5 + $0xa98] ss:$28 sps:$4 sm:$0xff]  }
 0x160   :  { %2721 = vmatprep.subr.bf16.mxu0 %v3916_v32  ;;  %v505_v32 = vrot.slane %v4208_v26, %v504_v27 }
 0x162   :  { %3392 = vmatpush3.bf16.msra.mxu1 %v3918_v35  ;;  %v2338_v35 = vadd.f32 %v4198_v12, %v505_v32 }
 0x163   :  { %2722 = vmatpush1.bf16.msra.mxu0 %v3914_v34  ;;  %3393 = vmatprep.subr.bf16.mxu1 %v3922_v38  ;;  %v2336_v34 = vadd.f32 %v4195_v11, %v501_v31 }
 0x164   :  { %2723 = vmatprep.subr.bf16.mxu0 %v3921_v37 }
 0x166   :  { %3394 = vmatpush3.bf16.msra.mxu1 %v3923_v39 }
 0x167   :  { %2724 = vmatpush1.bf16.msra.mxu0 %v3919_v17  ;;  %3395 = vmatprep.subr.bf16.mxu1 %v3927_v42 }
 0x168   :  { %2725 = vmatprep.subr.bf16.mxu0 %v3926_v41 }
 0x16a   :  { %3396 = vmatpush3.bf16.msra.mxu1 %v3928_v3 }
 0x16b   :  { %2726 = vmatpush1.bf16.msra.mxu0 %v3924_v44  ;;  %3397 = vmatprep.subr.bf16.mxu1 %v3932_v46  ;;  %v512_v46 = vsub.s32 3, %v4139_v43 }
 0x16c   :  { %2727 = vmatprep.subr.bf16.mxu0 %v3931_v45  ;;  %v508_v45 = vsub.s32 2, %v4139_v43 }
 0x16e   :  { %3398 = vmatpush3.bf16.msra.mxu1 %v3933_v48 }
 0x16f   :  { %2728 = vmatpush1.bf16.msra.mxu0 %v3929_v47  ;;  %3399 = vmatprep.subr.bf16.mxu1 %v3937_v52  ;;  %v513_v47 = vrot.slane %v4208_v26, %v512_v46 }
 0x170   :  { %2729 = vmatprep.subr.bf16.mxu0 %v3936_v50 }
 0x172   :  { %3400 = vmatpush3.bf16.msra.mxu1 %v3938_v54 }
 0x173   :  { %2730 = vmatpush1.bf16.msra.mxu0 %v3934_v53  ;;  %3401 = vmatprep.subr.bf16.mxu1 %v3942_v56 }
 0x174   :  { %2731 = vmatprep.subr.bf16.mxu0 %v3941_v55 }
 0x176   :  { %3402 = vmatpush3.bf16.msra.mxu1 %v3943_v58 }
 0x177   :  { %2732 = vmatpush1.bf16.msra.mxu0 %v3939_v57  ;;  %3409 = vmatprep.subr.bf16.mxu1 %v3947_v60 }
 0x178   :  { %2733 = vmatprep.subr.bf16.mxu0 %v3946_v59 }
 0x179   :  { %2866 = vmatmul.mubr.bf16.vlgmr.msra.gmra.mrb[12].mxu1 %v4154_v18  ;;  %v3959_v18 = vld [vmem:[#allocation5 + $0xa20] ss:$28 sps:$4 sm:$0xff]  }
 0x17a   :  { %3410 = vmatpush3.bf16.msra.mxu1 %v3948_v63  ;;  %2905 = vmatprep.mubr.bf16.mxu1 %v4167_v51  ;;  %v3968_v51 = vld [vmem:[#allocation5 + $0x7f8] ss:$28 sps:$4 sm:$0xff]  }
 0x17b   :  { %2734 = vmatpush1.bf16.msra.mxu0 %v3944_v61  ;;  %3411 = vmatprep.subr.bf16.mxu1 %v3952_v1 }
 0x17c   :  { %2735 = vmatprep.subr.bf16.mxu0 %v3951_v0 }
 0x17e   :  { %3412 = vmatpush3.bf16.msra.mxu1 %v3953_v4  ;;  %v524_v4 = vsub.s32 6, %v4139_v43 }
 0x17f   :  { %2736 = vmatpush1.bf16.msra.mxu0 %v3949_v2  ;;  %3413 = vmatprep.subr.bf16.mxu1 %v3957_v5 }
 0x180   :  { %2737 = vmatprep.subr.bf16.mxu0 %v3956_v62  ;;  %v525_v62 = vrot.slane %v4208_v26, %v524_v4 }
 0x182   :  { %3414 = vmatpush3.bf16.msra.mxu1 %v3958_v7 }
 0x183   :  { %2738 = vmatpush1.bf16.msra.mxu0 %v3954_v6  ;;  %3415 = vmatprep.subr.bf16.mxu1 %v3962_v9 }
 0x184   :  { %2739 = vmatprep.subr.bf16.mxu0 %v3961_v8 }
 0x186   :  { %3416 = vmatpush3.bf16.msra.mxu1 %v3963_v10 }
 0x187   :  { %2740 = vmatpush1.bf16.msra.mxu0 %v3959_v18  ;;  %3417 = vmatprep.subr.bf16.mxu1 %v3967_v14  ;;  %v520_v14 = vsub.s32 5, %v4139_v43 }
 0x188   :  { %2741 = vmatprep.subr.bf16.mxu0 %v3966_v13  ;;  %v516_v13 = vsub.s32 4, %v4139_v43 }
 0x18a   :  { %3418 = vmatpush3.bf16.msra.mxu1 %v3968_v51  ;;  %v521_v51 = vrot.slane %v4208_v26, %v520_v14 }
 0x18b   :  { %2742 = vmatpush1.bf16.msra.mxu0 %v3964_v15  ;;  %3419 = vmatprep.subr.bf16.mxu1 %v3972_v19  ;;  %v517_v15 = vrot.slane %v4208_v26, %v516_v13 }
 0x18c   :  { %2752 = vmatprep.subr.bf16.mxu0 %v3971_v16 }
 0x18e   :  { %2744 = vmatmul.mubr.bf16.vlgmr.msra.gmra.mrb[8].mxu0 %v4172_v28  ;;  %3420 = vmatpush3.bf16.msra.mxu1 %v3973_v21 }
 0x18f   :  { %2753 = vmatpush1.bf16.msra.mxu0 %v3969_v20  ;;  %3421 = vmatprep.subr.bf16.mxu1 %v3974_v22 }
 0x190   :  { %2784 = vmatprep.mubr.bf16.mxu0 %v4079_v36  ;;  %3433 = vmatprep.subr.bf16.mxu0 %v4080_v29 }
 0x192   :  { %3422 = vmatpush3.bf16.msra.mxu1 %v3975_v23 }
 0x193   :  { %3423 = vmatprep.subr.bf16.mxu1 %v3976_v25 }
 0x196   :  { %3424 = vmatpush3.bf16.msra.mxu1 %v3977_v30 }
 0x199   :  { %v2458_v36 = vpop.f32.mrb[0].mxu0  ;;  %2906 = vmatmul.mubr.bf16.vlgmr.msra.gmra.mrb[16].mxu1 %v4172_v28  ;;  %v509_v28 = vrot.slane %v4208_v26, %v508_v45 }
 0x19a   :  { %v3440_v37 = vadd.f32 %v2458_v36, %v2336_v34  ;;  %3363 = vmatmul.mubr.msk.bf16.vlgmr.msra.gmra.mrb[8].mxu0 %vm2297_vm0, %v4181_v40  ;;  %v2460_v38 = vpop.f32.mrb[1].mxu0 }
 0x19b   :  { %v3442_v17 = vadd.f32 %v2460_v38, %v2338_v35  ;;  %3434 = vmatpush3.bf16.msra.mxu0 %v3978_v33  ;;  %v2462_v39 = vpop.f32.mrb[2].mxu0  ;;  %3435 = vmatprep.mubr.msk.bf16.mxu0 %vm4081_vm1, %v4080_v29 }
 0x19c   :  { %v2463_v41 = vpop.f32.mrb[3].mxu0 }
 0x19d   :  { %v2960_v42 = vcombine.low %v3440_v37, %v3442_v17 }
 0x19f   :  { %v2968_v58 = vrot.slane %v2960_v42, %v4142_v49 }
 0x1a1   :  { %v2622_v44 = vpop.f32.mrb[4].mxu0 }
 0x1a2   :  { %3436 = vmatmul.mubr.msk.bf16.vlgmr.msra.gmra.mrb[12].mxu0 %vm2297_vm0, %v4181_v40  ;;  %v2624_v11 = vpop.f32.mrb[5].mxu0 }
 0x1a3   :  { %v2626_v12 = vpop.f32.mrb[6].mxu0 }
 0x1a4   :  { %v2627_v3 = vpop.f32.mrb[7].mxu0 }
 0x20c   :  { %v2581_v48 = vpop.f32.mrb[4].mxu1 }
 0x20d   :  { %v3443_v50 = vadd.f32 %v2581_v48, %v509_v28  ;;  %v2583_v52 = vpop.f32.mrb[5].mxu1 }
 0x20e   :  { %v3445_v53 = vadd.f32 %v2583_v52, %v513_v47  ;;  %v2585_v54 = vpop.f32.mrb[6].mxu1 }
 0x20f   :  { %v3444_v55 = vadd.f32 %v3443_v50, %v2622_v44  ;;  %v2586_v56 = vpop.f32.mrb[7].mxu1 }
 0x210   :  { %v3446_v57 = vadd.f32 %v3445_v53, %v2624_v11 }
 0x212   :  { %v2961_v40 = vcombine.low %v3444_v55, %v3446_v57 }
 0x214   :  { %v2975_v59 = vrot.slane %v2961_v40, %v4142_v49 }
 0x216   :  { %v2976_v60 = vcombine.low %v2968_v58, %v2975_v59 }
 0x218   :  { %2995 = vst [vmem:[#allocation8] sm:$0xff] %v2976_v60 }
 0x22c   :  { %v3381_v61 = vpop.f32.mrb[8].mxu1 }
 0x22d   :  { %v3382_v63 = vpop.f32.mrb[9].mxu1 }
 0x22e   :  { %v3383_v0 = vadd.f32 %v3382_v63, %v3381_v61  ;;  %v3384_v1 = vpop.f32.mrb[10].mxu1 }
 0x22f   :  { %v3385_v2 = vpop.f32.mrb[11].mxu1 }
 0x230   :  { %v2828_v7 = vadd.f32 %v3383_v0, %v525_v62 }
 0x24c   :  { %v3403_v5 = vpop.f32.mrb[12].mxu1 }
 0x24d   :  { %v3404_v6 = vpop.f32.mrb[13].mxu1 }
 0x24e   :  { %v3405_v8 = vadd.f32 %v3404_v6, %v3403_v5  ;;  %v3406_v9 = vpop.f32.mrb[14].mxu1 }
 0x24f   :  { %v3407_v18 = vpop.f32.mrb[15].mxu1 }
 0x250   :  { %v2868_v10 = vadd.f32 %v3405_v8, %v2828_v7 }
 0x26c   :  { %v3425_v19 = vpop.f32.mrb[16].mxu1 }
 0x26d   :  { %v2786_v16 = vpop.f32.mrb[8].mxu0  ;;  %v3426_v22 = vpop.f32.mrb[17].mxu1 }
 0x26e   :  { %v3447_v20 = vadd.f32 %v2786_v16, %v517_v15  ;;  %v2788_v21 = vpop.f32.mrb[9].mxu0  ;;  %v3427_v25 = vadd.f32 %v3426_v22, %v3425_v19  ;;  %v3428_v27 = vpop.f32.mrb[18].mxu1 }
 0x26f   :  { %v3448_v23 = vadd.f32 %v2788_v21, %v521_v51  ;;  %v2790_v24 = vpop.f32.mrb[10].mxu0  ;;  %v3429_v30 = vpop.f32.mrb[19].mxu1 }
 0x270   :  { %v2791_v29 = vpop.f32.mrb[11].mxu0  ;;  %v2908_v32 = vadd.f32 %v3427_v25, %v2868_v10 }
 0x271   :  { %v2977_v31 = vcombine.low %v3447_v20, %v3448_v23 }
 0x273   :  { %v2984_v35 = vrot.slane %v2977_v31, %v4142_v49 }
 0x275   :  { %v2947_v43 = vpop.f32.mrb[12].mxu0 }
 0x276   :  { %v2948_v33 = vadd.f32 %v2947_v43, %v2908_v32  ;;  %v3437_v34 = vpop.f32.mrb[13].mxu0 }
 0x277   :  { %v2950_v26 = vpop.f32.mrb[14].mxu0 }
 0x278   :  { %v2991_v36 = vrot.slane %v2948_v33, %v4142_v49  ;;  %v3438_v37 = vpop.f32.mrb[15].mxu0 }
 0x27a   :  { %v2992_v38 = vcombine.low %v2984_v35, %v2991_v36 }
 0x27c   :  { %3001 = vst.msk [vmem:[#allocation8 + $0x8] sm:$0x3f] %vm3000_vm6, %v2992_v38 }
 0x27d   :  { %4056 = shalt.err (!%p4053_p0)
}
 0x27e   :  { %s4057_s26 = scalar_lea.hbm %s4249_s3, 224 }
 0x27f   :  { %p4058_p1 = scmp.ne.s32.totalorder %s4249_s3, %s4057_s26  ;;  %p4061_p2 = scmp.lt.u32.totalorder %s4057_s26, %s4249_s3 }
 0x281   :  { %p4063_p3 = pnand %p4061_p2, %p4058_p1 }
 0x283   :  { %4066 = shalt.err (!%p4063_p3)
}
 0x284   :  { %3011 = dma.vmem_to_hbm [thread:$0]  %s3009_s22, 224, %s4249_s3, [#allocation4]  }
 0x285   :  { %4071 = dma.done.wait [#allocation4], 224  }
 0x286   :  { %4072 = vsyncadd [#allocation4], 4294967072 }
 0x287   :  { %3015 = vsyncpa [#allocation3], 1 }
 0x288   :  { %3016 = vsyncpa [#allocation6], 1 }
 0x289   :  { %3017 = vsyncpa [#allocation4], 1 }

</bundles_post_ra>
